<compile_context>
chip_gen: v7x
topology: tpu7x:2x2x1
jax: 0.10.0
libtpu: 0.0.40
codegen_flags: <defaults>
</compile_context>

<pallas_src>
import functools

import jax
import jax.numpy as jnp
from jax.experimental import pallas as pl
from jax.experimental.pallas import tpu as pltpu


# ----------------------------------------------------------------------------
# Fused kernel: per-tile phi MLP (bf16 MXU) + scaled-row mean pool accumulated
# into a resident (C, H) VMEM scratch + fused attention head on the last step.
# ----------------------------------------------------------------------------
def _fused_mil_kernel(
        tile_cid_ref,                                            # scalar prefetch (SMEM)
        scale_ref, x_ref, w1_ref, b1_ref, w2_ref, b2_ref,        # streamed per tile
        wfc_ref, bfc_ref, wab_ref, bab_ref, wc_ref, bc_ref,      # resident head weights
        wr_ref, br_ref, wcls_ref, bcls_ref,
        logits_ref, probs_ref,                                   # outputs (written on last step)
        hc_ref):                                                 # (C, H) VMEM scratch
    t = pl.program_id(0)
    cid = tile_cid_ref[t]                       # cluster owning this tile

    @pl.when(t == 0)
    def _init():
        hc_ref[...] = jnp.zeros_like(hc_ref)

    # Per-cluster 2-layer phi MLP on this tile (bf16 inputs, f32 accumulation).
    x = x_ref[...]                                                    # (TN, Din) bf16
    h1 = jnp.maximum(
        jnp.dot(x, w1_ref[...], preferred_element_type=jnp.float32)
        + b1_ref[...], 0.0)                                           # (TN, H) f32
    h2 = jnp.maximum(
        jnp.dot(h1.astype(jnp.bfloat16), w2_ref[...],
                preferred_element_type=jnp.float32)
        + b2_ref[...], 0.0)                                           # (TN, H) f32

    # Mean-pool partial as an MXU matvec: scale row is 1/count for this
    # cluster's valid rows, 0 for padding rows (so padded rows never count).
    pooled = jnp.dot(scale_ref[...], h2,
                     preferred_element_type=jnp.float32)              # (1, H) f32

    # O(H) accumulate into row `cid` of the resident cluster-feature scratch.
    hc_ref[pl.ds(cid, 1), :] = hc_ref[pl.ds(cid, 1), :] + pooled

    # Fused attention head + rho + classifier on the final grid step (f32).
    @pl.when(t == pl.num_programs(0) - 1)
    def _attn_head():
        d2 = wc_ref.shape[0]
        hc = hc_ref[...]                                              # (C, H)
        h = jnp.maximum(
            jnp.dot(hc, wfc_ref[...], preferred_element_type=jnp.float32)
            + bfc_ref[...], 0.0)                                      # (C, H)
        ab = jnp.dot(h, wab_ref[...], preferred_element_type=jnp.float32) \
            + bab_ref[...]                                            # (C, 2*D2)
        a = jnp.tanh(ab[:, :d2])
        b = jax.nn.sigmoid(ab[:, d2:])
        A = jnp.dot(a * b, wc_ref[...], preferred_element_type=jnp.float32) \
            + bc_ref[...]                                             # (C, 1)
        # softmax over the cluster axis (== torch softmax on A.T along dim=1)
        A = A - jnp.max(A, axis=0, keepdims=True)
        e = jnp.exp(A)
        attn = e / jnp.sum(e, axis=0, keepdims=True)                  # (C, 1)
        hp = jnp.sum(h * attn, axis=0, keepdims=True)                 # (1, H)
        hr = jnp.maximum(
            jnp.dot(hp, wr_ref[...], preferred_element_type=jnp.float32)
            + br_ref[...], 0.0)                                       # (1, D2)
        logits = jnp.dot(hr, wcls_ref[...],
                         preferred_element_type=jnp.float32) + bcls_ref[...]
        logits_ref[...] = logits
        m = jnp.max(logits, axis=1, keepdims=True)
        e2 = jnp.exp(logits - m)
        probs_ref[...] = e2 / jnp.sum(e2, axis=1, keepdims=True)


@functools.partial(jax.jit, static_argnames=("tn",))
def mil_cluster_fc_forward(x, cluster_id, params, *, tn=128):
    # tn: instances per tile.  Keep a multiple of 8; raise to 512-1024 at
    # production N (largest tile that fits the VMEM budget).
    N, Din = x.shape
    C, _, H = params["w1"].shape
    D2 = params["wa"].shape[1]
    n_classes = params["wcls"].shape[1]

    cid = cluster_id.astype(jnp.int32)
    cluster_range = jnp.arange(C, dtype=jnp.int32)
    counts = jnp.sum((cid[None, :] == cluster_range[:, None]).astype(jnp.int32),
                     axis=1)                                          # (C,)

    # Per-cluster tile layout in the sorted / tile-padded instance array.
    tiles_per_cluster = (counts + tn - 1) // tn                       # (C,)
    tile_start = jnp.cumsum(tiles_per_cluster) - tiles_per_cluster    # exclusive cumsum
    nt_total = int(pl.cdiv(N, tn) + C)    # static upper bound on total tiles
    Np = nt_total * tn

    # Stable grouping by cluster; scatter rows into per-cluster padded slots.
    order = jnp.argsort(cid)
    sorted_cid = cid[order]
    cum_before = jnp.cumsum(counts) - counts                          # (C,)
    ranks = jnp.arange(N, dtype=jnp.int32) - cum_before[sorted_cid]
    dest = tile_start[sorted_cid] * tn + ranks                        # (N,)

    x_sorted = jnp.zeros((Np, Din), jnp.bfloat16).at[dest].set(
        x.astype(jnp.bfloat16)[order])
    inv_cnt = 1.0 / jnp.maximum(counts, 1).astype(jnp.float32)
    scale = jnp.zeros((Np,), jnp.float32).at[dest].set(inv_cnt[sorted_cid])
    scale = scale.reshape(nt_total, 1, tn)                            # (nt, 1, tn)

    # Per-tile cluster id (scalar prefetch).  Unused trailing tiles (the
    # static upper bound on tile count) map to cluster 0 with all-zero rows
    # and all-zero scale, so they contribute nothing.
    tile_ids = jnp.arange(nt_total, dtype=jnp.int32)[:, None]
    belongs = (tile_ids >= tile_start[None, :]) & (
        tile_ids < (tile_start + tiles_per_cluster)[None, :])
    tile_cid = jnp.sum(belongs.astype(jnp.int32) * cluster_range[None, :],
                       axis=1)                                        # (nt,)

    # bf16 per-cluster MLP weights (native MXU dtype, half the HBM bytes).
    w1 = params["w1"].astype(jnp.bfloat16)
    w2 = params["w2"].astype(jnp.bfloat16)

    # Pack the gated-attention a/b branches into one matmul.
    wab = jnp.concatenate([params["wa"], params["wb"]], axis=1)       # (H, 2*D2)
    bab = jnp.concatenate([params["ba"], params["bb"]], axis=1)       # (1, 2*D2)

    logits, probs = pl.pallas_call(
        _fused_mil_kernel,
        out_shape=(jax.ShapeDtypeStruct((1, n_classes), jnp.float32),
                   jax.ShapeDtypeStruct((1, n_classes), jnp.float32)),
        grid_spec=pltpu.PrefetchScalarGridSpec(
            num_scalar_prefetch=1,
            grid=(nt_total,),
            in_specs=[
                # per-tile pooling scale row (1/count or 0), squeezed leading dim
                pl.BlockSpec((None, 1, tn), lambda t, tc: (t, 0, 0)),
                # sorted / padded instance tile
                pl.BlockSpec((tn, Din), lambda t, tc: (t, 0)),
                # per-cluster phi weights, selected via scalar prefetch
                pl.BlockSpec((None, Din, H), lambda t, tc: (tc[t], 0, 0)),   # W1[cid]
                pl.BlockSpec((None, 1, H), lambda t, tc: (tc[t], 0, 0)),     # b1[cid]
                pl.BlockSpec((None, H, H), lambda t, tc: (tc[t], 0, 0)),     # W2[cid]
                pl.BlockSpec((None, 1, H), lambda t, tc: (tc[t], 0, 0)),     # b2[cid]
                # attention-head weights: tiny, resident (constant index maps)
                pl.BlockSpec((H, H), lambda t, tc: (0, 0)),                  # wfc
                pl.BlockSpec((1, H), lambda t, tc: (0, 0)),                  # bfc
                pl.BlockSpec((H, 2 * D2), lambda t, tc: (0, 0)),             # [wa|wb]
                pl.BlockSpec((1, 2 * D2), lambda t, tc: (0, 0)),             # [ba|bb]
                pl.BlockSpec((D2, 1), lambda t, tc: (0, 0)),                 # wc
                pl.BlockSpec((1, 1), lambda t, tc: (0, 0)),                  # bc
                pl.BlockSpec((H, D2), lambda t, tc: (0, 0)),                 # wr
                pl.BlockSpec((1, D2), lambda t, tc: (0, 0)),                 # br
                pl.BlockSpec((D2, n_classes), lambda t, tc: (0, 0)),         # wcls
                pl.BlockSpec((1, n_classes), lambda t, tc: (0, 0)),          # bcls
            ],
            out_specs=(pl.BlockSpec((1, n_classes), lambda t, tc: (0, 0)),
                       pl.BlockSpec((1, n_classes), lambda t, tc: (0, 0))),
            scratch_shapes=[pltpu.VMEM((C, H), jnp.float32)],
        ),
        # Single sequential grid axis: the (C, H) scratch accumulates across
        # tiles and the fused head runs only on the last step.
        compiler_params=pltpu.CompilerParams(
            dimension_semantics=("arbitrary",),
            vmem_limit_bytes=48 * 1024 * 1024),
    )(tile_cid, scale, x_sorted,
      w1, params["b1"], w2, params["b2"],
      params["wfc"], params["bfc"], wab, bab,
      params["wc"], params["bc"], params["wr"], params["br"],
      params["wcls"], params["bcls"])

    y_hat = jnp.argmax(logits, axis=1).reshape(1, 1)
    return logits, probs, y_hat


# ----------------------------------------------------------------------------
# Pure-JAX reference for correctness checking.  bf16_matmul=True mirrors the
# kernel's mixed precision (bf16 operands, f32 accumulation) for a tight check.
# ----------------------------------------------------------------------------
def reference_forward(x, cluster_id, p, *, bf16_matmul=False):
    def mm(a, w):
        if bf16_matmul:
            return jnp.dot(a.astype(jnp.bfloat16), w.astype(jnp.bfloat16),
                           preferred_element_type=jnp.float32)
        return jnp.dot(a, w, preferred_element_type=jnp.float32)

    C = p["w1"].shape[0]
    hcs = []
    for i in range(C):
        h1 = jnp.maximum(mm(x, p["w1"][i]) + p["b1"][i], 0.0)
        h2 = jnp.maximum(mm(h1, p["w2"][i]) + p["b2"][i], 0.0)
        m = (cluster_id == i).astype(jnp.float32)[:, None]
        cnt = jnp.sum(m)
        hcs.append(jnp.sum(h2 * m, axis=0) / jnp.maximum(cnt, 1.0))
    hc = jnp.stack(hcs, 0)
    h = jnp.maximum(hc @ p["wfc"] + p["bfc"], 0.0)
    a = jnp.tanh(h @ p["wa"] + p["ba"])
    b = jax.nn.sigmoid(h @ p["wb"] + p["bb"])
    A = (a * b) @ p["wc"] + p["bc"]
    w = jax.nn.softmax(A[:, 0])
    hp = w @ h
    hr = jnp.maximum(hp @ p["wr"] + p["br"][0], 0.0)
    logits = (hr @ p["wcls"] + p["bcls"][0])[None, :]
    probs = jax.nn.softmax(logits, axis=1)
    return logits, probs


def init_params(key, d_in, h, d2, num_clusters, n_classes):
    ks = jax.random.split(key, 16)
    s = 0.05
    return {
        # per-cluster phi: Linear(d_in,h)+ReLU, Linear(h,h)+ReLU (dropout = no-op)
        "w1": jax.random.normal(ks[0], (num_clusters, d_in, h), jnp.float32) * s,
        "b1": jax.random.normal(ks[1], (num_clusters, 1, h), jnp.float32) * s,
        "w2": jax.random.normal(ks[2], (num_clusters, h, h), jnp.float32) * s,
        "b2": jax.random.normal(ks[3], (num_clusters, 1, h), jnp.float32) * s,
        # attention_net fc: Linear(h,h)+ReLU
        "wfc": jax.random.normal(ks[4], (h, h), jnp.float32) * s,
        "bfc": jax.random.normal(ks[5], (1, h), jnp.float32) * s,
        # Attn_Net_Gated: tanh(Linear(h,d2)), sigmoid(Linear(h,d2)), Linear(d2,1)
        "wa": jax.random.normal(ks[6], (h, d2), jnp.float32) * s,
        "ba": jax.random.normal(ks[7], (1, d2), jnp.float32) * s,
        "wb": jax.random.normal(ks[8], (h, d2), jnp.float32) * s,
        "bb": jax.random.normal(ks[9], (1, d2), jnp.float32) * s,
        "wc": jax.random.normal(ks[10], (d2, 1), jnp.float32) * s,
        "bc": jax.random.normal(ks[11], (1, 1), jnp.float32) * s,
        # rho: Linear(h,d2)+ReLU
        "wr": jax.random.normal(ks[12], (h, d2), jnp.float32) * s,
        "br": jax.random.normal(ks[13], (1, d2), jnp.float32) * s,
        # classifier: Linear(d2, n_classes)
        "wcls": jax.random.normal(ks[14], (d2, n_classes), jnp.float32) * s,
        "bcls": jax.random.normal(ks[15], (1, n_classes), jnp.float32) * s,
    }


if __name__ == "__main__":
    # Small, lane-dense stand-ins for the module's 'small' config [1024, 512, 256].
    # tn=32 is deliberately small so several clusters span multiple tiles and
    # the per-cluster padding / multi-tile accumulation paths are exercised.
    N, D_IN, H, D2 = 400, 256, 128, 128
    NUM_CLUSTERS, N_CLASSES = 8, 4
    TN = 32

    key = jax.random.PRNGKey(0)
    kx, kc, kp = jax.random.split(key, 3)
    x = jax.random.normal(kx, (N, D_IN), jnp.float32)
    cluster_id = jax.random.randint(kc, (N,), 0, NUM_CLUSTERS, jnp.int32)
    params = init_params(kp, D_IN, H, D2, NUM_CLUSTERS, N_CLASSES)

    logits, y_prob, y_hat = mil_cluster_fc_forward(x, cluster_id, params, tn=TN)
    jax.block_until_ready((logits, y_prob, y_hat))

    # Primary check: reference with matching bf16-on-MXU phi matmuls.
    ref_logits, ref_prob = reference_forward(x, cluster_id, params, bf16_matmul=True)
    assert jnp.allclose(logits, ref_logits, atol=5e-3, rtol=5e-3), "logits mismatch (bf16 ref)"
    assert jnp.allclose(y_prob, ref_prob, atol=5e-3, rtol=5e-3), "probs mismatch (bf16 ref)"

    # Sanity check: bf16 drift vs. the pure-f32 reference stays small.
    f32_logits, f32_prob = reference_forward(x, cluster_id, params, bf16_matmul=False)
    assert jnp.allclose(logits, f32_logits, atol=5e-2, rtol=5e-2), "logits mismatch (f32 ref)"
    assert jnp.allclose(y_prob, f32_prob, atol=5e-2, rtol=5e-2), "probs mismatch (f32 ref)"

    assert logits.shape == (1, N_CLASSES) and y_prob.shape == (1, N_CLASSES)
    assert y_hat.shape == (1, 1)

    print("KERNEL_OK")
</pallas_src>

<mosaic_0001>
module attributes {stable_mosaic.version = 11 : i64} {
  func.func @_fused_mil_kernel(%arg0: i32, %arg1: memref<21xi32, #tpu.memory_space<smem>>, %arg2: memref<1x1x32xf32, #tpu.memory_space<vmem>>, %arg3: memref<32x256xbf16, #tpu.memory_space<vmem>>, %arg4: memref<1x256x128xbf16, #tpu.memory_space<vmem>>, %arg5: memref<1x1x128xf32, #tpu.memory_space<vmem>>, %arg6: memref<1x128x128xbf16, #tpu.memory_space<vmem>>, %arg7: memref<1x1x128xf32, #tpu.memory_space<vmem>>, %arg8: memref<128x128xf32, #tpu.memory_space<vmem>>, %arg9: memref<1x128xf32, #tpu.memory_space<vmem>>, %arg10: memref<128x256xf32, #tpu.memory_space<vmem>>, %arg11: memref<1x256xf32, #tpu.memory_space<vmem>>, %arg12: memref<128x1xf32, #tpu.memory_space<vmem>>, %arg13: memref<1x1xf32, #tpu.memory_space<vmem>>, %arg14: memref<128x128xf32, #tpu.memory_space<vmem>>, %arg15: memref<1x128xf32, #tpu.memory_space<vmem>>, %arg16: memref<128x4xf32, #tpu.memory_space<vmem>>, %arg17: memref<1x4xf32, #tpu.memory_space<vmem>>, %arg18: memref<1x4xf32, #tpu.memory_space<vmem>>, %arg19: memref<1x4xf32, #tpu.memory_space<vmem>>, %arg20: memref<8x128xf32, #tpu.memory_space<vmem>>) attributes {dimension_semantics = [#tpu.dimension_semantics<arbitrary>], iteration_bounds = array<i64: 21>, scalar_prefetch = 1 : i64, scratch_operands = 1 : i64, tpu.core_type = #tpu.core_type<tc>, window_params = [{transform_indices = @transform_0, window_bounds = array<i64: 1, 1, 32>}, {transform_indices = @transform_1, window_bounds = array<i64: 32, 256>}, {transform_indices = @transform_2, window_bounds = array<i64: 1, 256, 128>}, {transform_indices = @transform_3, window_bounds = array<i64: 1, 1, 128>}, {transform_indices = @transform_4, window_bounds = array<i64: 1, 128, 128>}, {transform_indices = @transform_5, window_bounds = array<i64: 1, 1, 128>}, {pipeline_mode = #tpu.pipeline_mode<synchronous>, transform_indices = @transform_6, window_bounds = array<i64: 128, 128>}, {pipeline_mode = #tpu.pipeline_mode<synchronous>, transform_indices = @transform_7, window_bounds = array<i64: 1, 128>}, {pipeline_mode = #tpu.pipeline_mode<synchronous>, transform_indices = @transform_8, window_bounds = array<i64: 128, 256>}, {pipeline_mode = #tpu.pipeline_mode<synchronous>, transform_indices = @transform_9, window_bounds = array<i64: 1, 256>}, {pipeline_mode = #tpu.pipeline_mode<synchronous>, transform_indices = @transform_10, window_bounds = array<i64: 128, 1>}, {pipeline_mode = #tpu.pipeline_mode<synchronous>, transform_indices = @transform_11, window_bounds = array<i64: 1, 1>}, {pipeline_mode = #tpu.pipeline_mode<synchronous>, transform_indices = @transform_12, window_bounds = array<i64: 128, 128>}, {pipeline_mode = #tpu.pipeline_mode<synchronous>, transform_indices = @transform_13, window_bounds = array<i64: 1, 128>}, {pipeline_mode = #tpu.pipeline_mode<synchronous>, transform_indices = @transform_14, window_bounds = array<i64: 128, 4>}, {pipeline_mode = #tpu.pipeline_mode<synchronous>, transform_indices = @transform_15, window_bounds = array<i64: 1, 4>}, {pipeline_mode = #tpu.pipeline_mode<synchronous>, transform_indices = @transform_16, window_bounds = array<i64: 1, 4>}, {pipeline_mode = #tpu.pipeline_mode<synchronous>, transform_indices = @transform_17, window_bounds = array<i64: 1, 4>}]} {
    %0 = arith.index_cast %arg0 : i32 to index
    %1 = memref.load %arg1[%0] : memref<21xi32, #tpu.memory_space<smem>>
    %c0_i32 = arith.constant 0 : i32
    %2 = arith.cmpi eq, %arg0, %c0_i32 : i32
    %3 = arith.extui %2 : i1 to i32
    %c0_i32_0 = arith.constant 0 : i32
    %4 = arith.cmpi ne, %3, %c0_i32_0 : i32
    scf.if %4 {
      %cst_24 = arith.constant 0.000000e+00 : f32
      %36 = vector.broadcast %cst_24 : f32 to vector<8x128xf32>
      %c0_25 = arith.constant 0 : index
      %c0_26 = arith.constant 0 : index
      %37 = vector.load %arg20[%c0_25, %c0_26] : memref<8x128xf32, #tpu.memory_space<vmem>>, vector<8x128xf32>
      tpu.vector_store %arg20[%c0_25, %c0_26], %36 {strides = array<i32>} : memref<8x128xf32, #tpu.memory_space<vmem>>, vector<8x128xf32>,
    } else {
    }
    %c0 = arith.constant 0 : index
    %c0_1 = arith.constant 0 : index
    %5 = vector.load %arg3[%c0, %c0_1] : memref<32x256xbf16, #tpu.memory_space<vmem>>, vector<32x256xbf16>
    %c0_2 = arith.constant 0 : index
    %c0_3 = arith.constant 0 : index
    %c0_4 = arith.constant 0 : index
    %6 = vector.load %arg4[%c0_2, %c0_3, %c0_4] : memref<1x256x128xbf16, #tpu.memory_space<vmem>>, vector<1x256x128xbf16>
    %7 = vector.shape_cast %6 : vector<1x256x128xbf16> to vector<256x128xbf16>
    %cst = arith.constant dense<0.000000e+00> : vector<32x128xf32>
    %8 = tpu.matmul %5, %7, %cst {dimension_numbers = #tpu.dot_dimension_numbers<[1], [0], [0], [1], [0, 0, 1, 1], [], []>} : vector<32x256xbf16>, vector<256x128xbf16>, vector<32x128xf32> -> vector<32x128xf32>
    %c0_5 = arith.constant 0 : index
    %c0_6 = arith.constant 0 : index
    %c0_7 = arith.constant 0 : index
    %9 = vector.load %arg5[%c0_5, %c0_6, %c0_7] : memref<1x1x128xf32, #tpu.memory_space<vmem>>, vector<1x1x128xf32>
    %10 = vector.shape_cast %9 : vector<1x1x128xf32> to vector<1x128xf32>
    %11 = vector.broadcast %10 : vector<1x128xf32> to vector<32x128xf32>
    %12 = arith.addf %8, %11 : vector<32x128xf32>
    %cst_8 = arith.constant 0.000000e+00 : f32
    %13 = vector.broadcast %cst_8 : f32 to vector<32x128xf32>
    %14 = arith.maximumf %12, %13 : vector<32x128xf32>
    %15 = arith.truncf %14 : vector<32x128xf32> to vector<32x128xbf16>
    %c0_9 = arith.constant 0 : index
    %c0_10 = arith.constant 0 : index
    %c0_11 = arith.constant 0 : index
    %16 = vector.load %arg6[%c0_9, %c0_10, %c0_11] : memref<1x128x128xbf16, #tpu.memory_space<vmem>>, vector<1x128x128xbf16>
    %17 = vector.shape_cast %16 : vector<1x128x128xbf16> to vector<128x128xbf16>
    %cst_12 = arith.constant dense<0.000000e+00> : vector<32x128xf32>
    %18 = tpu.matmul %15, %17, %cst_12 {dimension_numbers = #tpu.dot_dimension_numbers<[1], [0], [0], [1], [0, 0, 1, 1], [], []>} : vector<32x128xbf16>, vector<128x128xbf16>, vector<32x128xf32> -> vector<32x128xf32>
    %c0_13 = arith.constant 0 : index
    %c0_14 = arith.constant 0 : index
    %c0_15 = arith.constant 0 : index
    %19 = vector.load %arg7[%c0_13, %c0_14, %c0_15] : memref<1x1x128xf32, #tpu.memory_space<vmem>>, vector<1x1x128xf32>
    %20 = vector.shape_cast %19 : vector<1x1x128xf32> to vector<1x128xf32>
    %21 = vector.broadcast %20 : vector<1x128xf32> to vector<32x128xf32>
    %22 = arith.addf %18, %21 : vector<32x128xf32>
    %cst_16 = arith.constant 0.000000e+00 : f32
    %23 = vector.broadcast %cst_16 : f32 to vector<32x128xf32>
    %24 = arith.maximumf %22, %23 : vector<32x128xf32>
    %c0_17 = arith.constant 0 : index
    %c0_18 = arith.constant 0 : index
    %c0_19 = arith.constant 0 : index
    %25 = vector.load %arg2[%c0_17, %c0_18, %c0_19] : memref<1x1x32xf32, #tpu.memory_space<vmem>>, vector<1x1x32xf32>
    %26 = vector.shape_cast %25 : vector<1x1x32xf32> to vector<1x32xf32>
    %cst_20 = arith.constant dense<0.000000e+00> : vector<1x128xf32>
    %27 = tpu.matmul %26, %24, %cst_20 {dimension_numbers = #tpu.dot_dimension_numbers<[1], [0], [0], [1], [0, 0, 1, 1], [], []>} : vector<1x32xf32>, vector<32x128xf32>, vector<1x128xf32> -> vector<1x128xf32>
    %28 = arith.index_cast %1 : i32 to index
    %c0_21 = arith.constant 0 : index
    %29 = vector.load %arg20[%28, %c0_21] : memref<8x128xf32, #tpu.memory_space<vmem>>, vector<1x128xf32>
    %30 = arith.addf %29, %27 : vector<1x128xf32>
    %31 = arith.index_cast %1 : i32 to index
    %c0_22 = arith.constant 0 : index
    %32 = vector.load %arg20[%31, %c0_22] : memref<8x128xf32, #tpu.memory_space<vmem>>, vector<1x128xf32>
    tpu.vector_store %arg20[%31, %c0_22], %30 {strides = array<i32>} : memref<8x128xf32, #tpu.memory_space<vmem>>, vector<1x128xf32>,
    %c20_i32 = arith.constant 20 : i32
    %33 = arith.cmpi eq, %arg0, %c20_i32 : i32
    %34 = arith.extui %33 : i1 to i32
    %c0_i32_23 = arith.constant 0 : i32
    %35 = arith.cmpi ne, %34, %c0_i32_23 : i32
    scf.if %35 {
      %c0_24 = arith.constant 0 : index
      %c0_25 = arith.constant 0 : index
      %36 = vector.load %arg20[%c0_24, %c0_25] : memref<8x128xf32, #tpu.memory_space<vmem>>, vector<8x128xf32>
      %c0_26 = arith.constant 0 : index
      %c0_27 = arith.constant 0 : index
      %37 = vector.load %arg8[%c0_26, %c0_27] : memref<128x128xf32, #tpu.memory_space<vmem>>, vector<128x128xf32>
      %cst_28 = arith.constant dense<0.000000e+00> : vector<8x128xf32>
      %38 = tpu.matmul %36, %37, %cst_28 {dimension_numbers = #tpu.dot_dimension_numbers<[1], [0], [0], [1], [0, 0, 1, 1], [], []>} : vector<8x128xf32>, vector<128x128xf32>, vector<8x128xf32> -> vector<8x128xf32>
      %c0_29 = arith.constant 0 : index
      %c0_30 = arith.constant 0 : index
      %39 = vector.load %arg9[%c0_29, %c0_30] : memref<1x128xf32, #tpu.memory_space<vmem>>, vector<1x128xf32>
      %40 = vector.broadcast %39 : vector<1x128xf32> to vector<8x128xf32>
      %41 = arith.addf %38, %40 : vector<8x128xf32>
      %cst_31 = arith.constant 0.000000e+00 : f32
      %42 = vector.broadcast %cst_31 : f32 to vector<8x128xf32>
      %43 = arith.maximumf %41, %42 : vector<8x128xf32>
      %c0_32 = arith.constant 0 : index
      %c0_33 = arith.constant 0 : index
      %44 = vector.load %arg10[%c0_32, %c0_33] : memref<128x256xf32, #tpu.memory_space<vmem>>, vector<128x256xf32>
      %cst_34 = arith.constant dense<0.000000e+00> : vector<8x256xf32>
      %45 = tpu.matmul %43, %44, %cst_34 {dimension_numbers = #tpu.dot_dimension_numbers<[1], [0], [0], [1], [0, 0, 1, 1], [], []>} : vector<8x128xf32>, vector<128x256xf32>, vector<8x256xf32> -> vector<8x256xf32>
      %c0_35 = arith.constant 0 : index
      %c0_36 = arith.constant 0 : index
      %46 = vector.load %arg11[%c0_35, %c0_36] : memref<1x256xf32, #tpu.memory_space<vmem>>, vector<1x256xf32>
      %47 = vector.broadcast %46 : vector<1x256xf32> to vector<8x256xf32>
      %48 = arith.addf %45, %47 : vector<8x256xf32>
      %49 = vector.extract_strided_slice %48 {offsets = [0, 0], sizes = [8, 128], strides = [1, 1]} : vector<8x256xf32> to vector<8x128xf32>
      %50 = math.tanh %49 : vector<8x128xf32>
      %51 = vector.extract_strided_slice %48 {offsets = [0, 128], sizes = [8, 128], strides = [1, 1]} : vector<8x256xf32> to vector<8x128xf32>
      %52 = arith.negf %51 : vector<8x128xf32>
      %53 = math.exp %52 : vector<8x128xf32>
      %cst_37 = arith.constant 1.000000e+00 : f32
      %54 = vector.broadcast %cst_37 : f32 to vector<8x128xf32>
      %55 = arith.addf %54, %53 : vector<8x128xf32>
      %56 = arith.divf %54, %55 : vector<8x128xf32>
      %57 = arith.mulf %50, %56 : vector<8x128xf32>
      %c0_38 = arith.constant 0 : index
      %c0_39 = arith.constant 0 : index
      %58 = vector.load %arg12[%c0_38, %c0_39] : memref<128x1xf32, #tpu.memory_space<vmem>>, vector<128x1xf32>
      %cst_40 = arith.constant dense<0.000000e+00> : vector<8x1xf32>
      %59 = tpu.matmul %57, %58, %cst_40 {dimension_numbers = #tpu.dot_dimension_numbers<[1], [0], [0], [1], [0, 0, 1, 1], [], []>} : vector<8x128xf32>, vector<128x1xf32>, vector<8x1xf32> -> vector<8x1xf32>
      %c0_41 = arith.constant 0 : index
      %c0_42 = arith.constant 0 : index
      %60 = vector.load %arg13[%c0_41, %c0_42] : memref<1x1xf32, #tpu.memory_space<vmem>>, vector<1x1xf32>
      %61 = vector.broadcast %60 : vector<1x1xf32> to vector<8x1xf32>
      %62 = arith.addf %59, %61 : vector<8x1xf32>
      %cst_43 = arith.constant dense<0xFF800000> : vector<1xf32>
      %63 = vector.multi_reduction <maximumf>, %62, %cst_43 [0] : vector<8x1xf32> to vector<1xf32>
      %64 = vector.shape_cast %63 : vector<1xf32> to vector<1x1xf32>
      %65 = vector.broadcast %64 : vector<1x1xf32> to vector<8x1xf32>
      %66 = arith.subf %62, %65 : vector<8x1xf32>
      %67 = math.exp %66 : vector<8x1xf32>
      %cst_44 = arith.constant dense<0.000000e+00> : vector<1xf32>
      %68 = vector.multi_reduction <add>, %67, %cst_44 [0] : vector<8x1xf32> to vector<1xf32>
      %69 = vector.shape_cast %68 : vector<1xf32> to vector<1x1xf32>
      %70 = vector.broadcast %69 : vector<1x1xf32> to vector<8x1xf32>
      %71 = arith.divf %67, %70 : vector<8x1xf32>
      %72 = vector.broadcast %71 : vector<8x1xf32> to vector<8x128xf32>
      %73 = arith.mulf %43, %72 : vector<8x128xf32>
      %cst_45 = arith.constant dense<0.000000e+00> : vector<128xf32>
      %74 = vector.multi_reduction <add>, %73, %cst_45 [0] : vector<8x128xf32> to vector<128xf32>
      %75 = vector.shape_cast %74 : vector<128xf32> to vector<1x128xf32>
      %c0_46 = arith.constant 0 : index
      %c0_47 = arith.constant 0 : index
      %76 = vector.load %arg14[%c0_46, %c0_47] : memref<128x128xf32, #tpu.memory_space<vmem>>, vector<128x128xf32>
      %cst_48 = arith.constant dense<0.000000e+00> : vector<1x128xf32>
      %77 = tpu.matmul %75, %76, %cst_48 {dimension_numbers = #tpu.dot_dimension_numbers<[1], [0], [0], [1], [0, 0, 1, 1], [], []>} : vector<1x128xf32>, vector<128x128xf32>, vector<1x128xf32> -> vector<1x128xf32>
      %c0_49 = arith.constant 0 : index
      %c0_50 = arith.constant 0 : index
      %78 = vector.load %arg15[%c0_49, %c0_50] : memref<1x128xf32, #tpu.memory_space<vmem>>, vector<1x128xf32>
      %79 = arith.addf %77, %78 : vector<1x128xf32>
      %cst_51 = arith.constant 0.000000e+00 : f32
      %80 = vector.broadcast %cst_51 : f32 to vector<1x128xf32>
      %81 = arith.maximumf %79, %80 : vector<1x128xf32>
      %c0_52 = arith.constant 0 : index
      %c0_53 = arith.constant 0 : index
      %82 = vector.load %arg16[%c0_52, %c0_53] : memref<128x4xf32, #tpu.memory_space<vmem>>, vector<128x4xf32>
      %cst_54 = arith.constant dense<0.000000e+00> : vector<1x4xf32>
      %83 = tpu.matmul %81, %82, %cst_54 {dimension_numbers = #tpu.dot_dimension_numbers<[1], [0], [0], [1], [0, 0, 1, 1], [], []>} : vector<1x128xf32>, vector<128x4xf32>, vector<1x4xf32> -> vector<1x4xf32>
      %c0_55 = arith.constant 0 : index
      %c0_56 = arith.constant 0 : index
      %84 = vector.load %arg17[%c0_55, %c0_56] : memref<1x4xf32, #tpu.memory_space<vmem>>, vector<1x4xf32>
      %85 = arith.addf %83, %84 : vector<1x4xf32>
      %c0_57 = arith.constant 0 : index
      %c0_58 = arith.constant 0 : index
      %86 = vector.load %arg18[%c0_57, %c0_58] : memref<1x4xf32, #tpu.memory_space<vmem>>, vector<1x4xf32>
      tpu.vector_store %arg18[%c0_57, %c0_58], %85 {strides = array<i32>} : memref<1x4xf32, #tpu.memory_space<vmem>>, vector<1x4xf32>,
      %cst_59 = arith.constant dense<0xFF800000> : vector<1xf32>
      %87 = vector.multi_reduction <maximumf>, %85, %cst_59 [1] : vector<1x4xf32> to vector<1xf32>
      %88 = vector.shape_cast %87 : vector<1xf32> to vector<1x1xf32>
      %89 = vector.broadcast %88 : vector<1x1xf32> to vector<1x4xf32>
      %90 = arith.subf %85, %89 : vector<1x4xf32>
      %91 = math.exp %90 : vector<1x4xf32>
      %cst_60 = arith.constant dense<0.000000e+00> : vector<1xf32>
      %92 = vector.multi_reduction <add>, %91, %cst_60 [1] : vector<1x4xf32> to vector<1xf32>
      %93 = vector.shape_cast %92 : vector<1xf32> to vector<1x1xf32>
      %94 = vector.broadcast %93 : vector<1x1xf32> to vector<1x4xf32>
      %95 = arith.divf %91, %94 : vector<1x4xf32>
      %c0_61 = arith.constant 0 : index
      %c0_62 = arith.constant 0 : index
      %96 = vector.load %arg19[%c0_61, %c0_62] : memref<1x4xf32, #tpu.memory_space<vmem>>, vector<1x4xf32>
      tpu.vector_store %arg19[%c0_61, %c0_62], %95 {strides = array<i32>} : memref<1x4xf32, #tpu.memory_space<vmem>>, vector<1x4xf32>,
    } else {
    }
    return
  }
  func.func @transform_0(%arg0: i32, %arg1: memref<21xi32, #tpu.memory_space<smem>>) -> (i32, i32, i32) {
    %c0_i32 = arith.constant 0 : i32
    %c0_i32_0 = arith.constant 0 : i32
    %c0_i32_1 = arith.constant 0 : i32
    return %arg0, %c0_i32, %c0_i32_0 : i32, i32, i32
  }
  func.func @transform_1(%arg0: i32, %arg1: memref<21xi32, #tpu.memory_space<smem>>) -> (i32, i32) {
    %c0_i32 = arith.constant 0 : i32
    %c0_i32_0 = arith.constant 0 : i32
    return %arg0, %c0_i32 : i32, i32
  }
  func.func @transform_2(%arg0: i32, %arg1: memref<21xi32, #tpu.memory_space<smem>>) -> (i32, i32, i32) {
    %0 = arith.index_cast %arg0 : i32 to index
    %1 = memref.load %arg1[%0] : memref<21xi32, #tpu.memory_space<smem>>
    %c0_i32 = arith.constant 0 : i32
    %c0_i32_0 = arith.constant 0 : i32
    %c0_i32_1 = arith.constant 0 : i32
    return %1, %c0_i32, %c0_i32_0 : i32, i32, i32
  }
  func.func @transform_3(%arg0: i32, %arg1: memref<21xi32, #tpu.memory_space<smem>>) -> (i32, i32, i32) {
    %0 = arith.index_cast %arg0 : i32 to index
    %1 = memref.load %arg1[%0] : memref<21xi32, #tpu.memory_space<smem>>
    %c0_i32 = arith.constant 0 : i32
    %c0_i32_0 = arith.constant 0 : i32
    %c0_i32_1 = arith.constant 0 : i32
    return %1, %c0_i32, %c0_i32_0 : i32, i32, i32
  }
  func.func @transform_4(%arg0: i32, %arg1: memref<21xi32, #tpu.memory_space<smem>>) -> (i32, i32, i32) {
    %0 = arith.index_cast %arg0 : i32 to index
    %1 = memref.load %arg1[%0] : memref<21xi32, #tpu.memory_space<smem>>
    %c0_i32 = arith.constant 0 : i32
    %c0_i32_0 = arith.constant 0 : i32
    %c0_i32_1 = arith.constant 0 : i32
    return %1, %c0_i32, %c0_i32_0 : i32, i32, i32
  }
  func.func @transform_5(%arg0: i32, %arg1: memref<21xi32, #tpu.memory_space<smem>>) -> (i32, i32, i32) {
    %0 = arith.index_cast %arg0 : i32 to index
    %1 = memref.load %arg1[%0] : memref<21xi32, #tpu.memory_space<smem>>
    %c0_i32 = arith.constant 0 : i32
    %c0_i32_0 = arith.constant 0 : i32
    %c0_i32_1 = arith.constant 0 : i32
    return %1, %c0_i32, %c0_i32_0 : i32, i32, i32
  }
  func.func @transform_6(%arg0: i32, %arg1: memref<21xi32, #tpu.memory_space<smem>>) -> (i32, i32) {
    %c0_i32 = arith.constant 0 : i32
    %c0_i32_0 = arith.constant 0 : i32
    %c0_i32_1 = arith.constant 0 : i32
    return %c0_i32, %c0_i32_0 : i32, i32
  }
  func.func @transform_7(%arg0: i32, %arg1: memref<21xi32, #tpu.memory_space<smem>>) -> (i32, i32) {
    %c0_i32 = arith.constant 0 : i32
    %c0_i32_0 = arith.constant 0 : i32
    %c0_i32_1 = arith.constant 0 : i32
    return %c0_i32, %c0_i32_0 : i32, i32
  }
  func.func @transform_8(%arg0: i32, %arg1: memref<21xi32, #tpu.memory_space<smem>>) -> (i32, i32) {
    %c0_i32 = arith.constant 0 : i32
    %c0_i32_0 = arith.constant 0 : i32
    %c0_i32_1 = arith.constant 0 : i32
    return %c0_i32, %c0_i32_0 : i32, i32
  }
  func.func @transform_9(%arg0: i32, %arg1: memref<21xi32, #tpu.memory_space<smem>>) -> (i32, i32) {
    %c0_i32 = arith.constant 0 : i32
    %c0_i32_0 = arith.constant 0 : i32
    %c0_i32_1 = arith.constant 0 : i32
    return %c0_i32, %c0_i32_0 : i32, i32
  }
  func.func @transform_10(%arg0: i32, %arg1: memref<21xi32, #tpu.memory_space<smem>>) -> (i32, i32) {
    %c0_i32 = arith.constant 0 : i32
    %c0_i32_0 = arith.constant 0 : i32
    %c0_i32_1 = arith.constant 0 : i32
    return %c0_i32, %c0_i32_0 : i32, i32
  }
  func.func @transform_11(%arg0: i32, %arg1: memref<21xi32, #tpu.memory_space<smem>>) -> (i32, i32) {
    %c0_i32 = arith.constant 0 : i32
    %c0_i32_0 = arith.constant 0 : i32
    %c0_i32_1 = arith.constant 0 : i32
    return %c0_i32, %c0_i32_0 : i32, i32
  }
  func.func @transform_12(%arg0: i32, %arg1: memref<21xi32, #tpu.memory_space<smem>>) -> (i32, i32) {
    %c0_i32 = arith.constant 0 : i32
    %c0_i32_0 = arith.constant 0 : i32
    %c0_i32_1 = arith.constant 0 : i32
    return %c0_i32, %c0_i32_0 : i32, i32
  }
  func.func @transform_13(%arg0: i32, %arg1: memref<21xi32, #tpu.memory_space<smem>>) -> (i32, i32) {
    %c0_i32 = arith.constant 0 : i32
    %c0_i32_0 = arith.constant 0 : i32
    %c0_i32_1 = arith.constant 0 : i32
    return %c0_i32, %c0_i32_0 : i32, i32
  }
  func.func @transform_14(%arg0: i32, %arg1: memref<21xi32, #tpu.memory_space<smem>>) -> (i32, i32) {
    %c0_i32 = arith.constant 0 : i32
    %c0_i32_0 = arith.constant 0 : i32
    %c0_i32_1 = arith.constant 0 : i32
    return %c0_i32, %c0_i32_0 : i32, i32
  }
  func.func @transform_15(%arg0: i32, %arg1: memref<21xi32, #tpu.memory_space<smem>>) -> (i32, i32) {
    %c0_i32 = arith.constant 0 : i32
    %c0_i32_0 = arith.constant 0 : i32
    %c0_i32_1 = arith.constant 0 : i32
    return %c0_i32, %c0_i32_0 : i32, i32
  }
  func.func @transform_16(%arg0: i32, %arg1: memref<21xi32, #tpu.memory_space<smem>>) -> (i32, i32) {
    %c0_i32 = arith.constant 0 : i32
    %c0_i32_0 = arith.constant 0 : i32
    %c0_i32_1 = arith.constant 0 : i32
    return %c0_i32, %c0_i32_0 : i32, i32
  }
  func.func @transform_17(%arg0: i32, %arg1: memref<21xi32, #tpu.memory_space<smem>>) -> (i32, i32) {
    %c0_i32 = arith.constant 0 : i32
    %c0_i32_0 = arith.constant 0 : i32
    %c0_i32_1 = arith.constant 0 : i32
    return %c0_i32, %c0_i32_0 : i32, i32
  }
}

</mosaic_0001>

<bundles_post_ra>
// kernel: mil_cluster_fc_forward.1
= control target key start
LH: loop header
LB: loop body
LE: loop exit
PB: predicated region body
PF: predicated region fallthrough
CT: control target
= control target key end

     0   :  { %s2903_s0 = inlined_call_operand.vmem [shape: s32[21], index: 0, kind: input, shape index: {}]   ;;  %s2904_s1 = inlined_call_operand.vmem [shape: f32[21,1,32], index: 1, kind: input, shape index: {}]   ;;  %s2905_s2 = inlined_call_operand.vmem [shape: bf16[672,256], index: 2, kind: input, shape index: {}]   ;;  %s2906_s3 = inlined_call_operand.vmem [shape: bf16[8,256,128], index: 3, kind: input, shape index: {}]   ;;  %s2907_s4 = inlined_call_operand.vmem [shape: f32[8,1,128], index: 4, kind: input, shape index: {}]   ;;  %s2908_s5 = inlined_call_operand.vmem [shape: bf16[8,128,128], index: 5, kind: input, shape index: {}]   ;;  %s2909_s6 = inlined_call_operand.vmem [shape: f32[8,1,128], index: 6, kind: input, shape index: {}]   ;;  %s2910_s7 = inlined_call_operand.vmem [shape: f32[128,128], index: 7, kind: input, shape index: {}]   ;;  %s2911_s8 = inlined_call_operand.vmem [shape: f32[1,128], index: 8, kind: input, shape index: {}]   ;;  %s2912_s9 = inlined_call_operand.vmem [shape: f32[128,256], index: 9, kind: input, shape index: {}]   ;;  %s2913_s10 = inlined_call_operand.vmem [shape: f32[1,256], index: 10, kind: input, shape index: {}]   ;;  %s2914_s11 = inlined_call_operand.vmem [shape: f32[128,1], index: 11, kind: input, shape index: {}]   ;;  %s2915_s13 = inlined_call_operand.vmem [shape: f32[128,128], index: 13, kind: input, shape index: {}]   ;;  %s2916_s14 = inlined_call_operand.vmem [shape: f32[1,128], index: 14, kind: input, shape index: {}]   ;;  %s2917_s15 = inlined_call_operand.vmem [shape: f32[128,4], index: 15, kind: input, shape index: {}]   ;;  %s2918_s16 = inlined_call_operand.vmem [shape: f32[1,4], index: 16, kind: input, shape index: {}]   ;;  %s2919_s17 = inlined_call_operand.vmem [shape: f32[1,4], index: 17, kind: output, shape index: {0}]   ;;  %s2920_s18 = inlined_call_operand.hbm [shape: f32[1,4], index: 18, kind: output, shape index: {1}]   ;;  %s2921_s12 = inlined_call_operand.<no memory space> [shape: f32[1,1], index: 12, kind: input, shape index: {}]  }
   0x1   :  { %2925 = sst [smem:[#allocation11_spill]] %s2903_s0  ;;  %v28_v0 = vstv %s2921_s12 }
   0x2   :  { %2926 = sst [smem:[#allocation12_spill]] %s2904_s1  ;;  %s2932_s29 = sld [smem:[#allocation11_spill]]  ;;  %29 = vst [vmem:[#allocation5] sm:$0x1] %v28_v0 }
   0x3   :  { %2927 = sst [smem:[#allocation13_spill]] %s2905_s2 }
   0x4   :  { %2928 = sst [smem:[#allocation14_spill]] %s2915_s13 }
   0x5   :  { %2929 = sst [smem:[#allocation15_spill]] %s2918_s16 }
   0x6   :  { %2930 = sst [smem:[#allocation16_spill]] %s2919_s17 }
   0x7   :  { %2931 = sst [smem:[#allocation17_spill]] %s2920_s18 }
   0x8   :  { %s24_s13 = sshll.u32 %s2932_s29, 4  ;;  %s25_s13 = int_to_ptr.vmem [resolvable:$true] %s24_s13 }
   0x9   :  { %s2260_s19 = scalar_lea.vmem %s25_s13, 16  ;;  %p2265_p1 = scmp.lt.s32.totalorder %s25_s13, %s25_s13 }
   0xa   :  { %p2261_p0 = scmp.ne.s32.totalorder %s25_s13, %s2260_s19  ;;  %p2266_p2 = scmp.lt.s32.totalorder %s2260_s19, %s2260_s19 }
   0xc   :  { %p2267_p3 = por %p2266_p2, %p2265_p1 }
   0xe   :  { %p2268_p4 = pnand %p2267_p3, %p2261_p0 }
  0x10   :  { %2271 = shalt.err (!%p2268_p4)  }
  0x11   :  { %s2312_s1 = smov [#allocation4]  }
  0x12   :  { %27 = dma.vmem_to_smem %s25_s13, 16, %s2312_s1, [#allocation3] }
  0x13   :  { %2302 = dma.done.wait [#allocation3], 16 }
  0x14   :  { %2303 = vsyncadd [#allocation3], 4294967280 }
  0x15   :  { %31 = sfence }
  0x16   :  { %32 = vsyncpa [#allocation7], 0  ;;  %s2423_s20 = smov 0  }
  0x17 LB: > { %2933 = sst [smem:[#allocation10_spill]] %s2310_s20  ;;  %s2429_s12 = sadd.s32 4294967295, %s2310_s20   ;;  %s2310_s20 = sphi %s2423_s20, %s38_s20  }
  0x18   : > { %p1724_p5 = scmp.ge.s32.totalorder %s2310_s20, 1  ;;  %p552_p6 = scmp.lt.s32.totalorder %s2310_s20, 22 }
  0x1a   : > { %p553_p7 = pnand %p1724_p5, %p552_p6 }
  0x1b   : > { %p623_p8 = scmp.lt.s32.totalorder (!%p553_p7), %s2429_s12, 20  ;;  %s1725_s13 = sshll.u32 (!%p553_p7), %s2429_s12, 2 }
  0x1c   : > { %556 = sbr.rel (%p553_p7) target bundleno = 2411 (0x96b), region = 84  ;;  %p627_p9 = scmp.lt.s32.totalorder (!%p553_p7), %s1725_s13, 83 }
  0x1d   : > { %s633_s21 = sld [smem:[#allocation4 + %s2429_s12]] (!%p553_p7)  ;;  %p1732_p0 = scmp.ne.s32.totalorder (!%p553_p7), %s2429_s12, 0 }
  0x1e   : > { %s2934_s24 = sld [smem:[#allocation12_spill]] (!%p553_p7)  ;;  %s2935_s0 = sld [smem:[#allocation13_spill]] (!%p553_p7) }
  0x1f   : > { %s640_s26 = sld [smem:[#allocation4 + %s2429_s12]] (!%p553_p7) }
  0x20   : > { %s645_s28 = sld [smem:[#allocation4 + %s2429_s12]] (!%p553_p7) }
  0x21   : > { %s652_s1 = sld [smem:[#allocation4 + %s2429_s12]] (!%p553_p7) }
  0x22   : > { %s2452_s20 = sld [smem:[#allocation4 + %s2429_s12]] (!%p553_p7) }
  0x23   : > { %s2437_s22 = scalar_select %p623_p8, %s2429_s12, 20 }
  0x24   : > { %s2944_s13 = smov (!%p627_p9, %s1725_s13), 83  ;;  %p634_p10 = scmp.lt.s32.totalorder %s633_s21, 7  ;;  %v2313_v1 = vmov (!%p1732_p0), 0.0  }
  0x25   : > { %s625_s25 = scalar_lea.vmem %s2934_s24, %s2437_s22  ;;  %s1772_s27 = sshll.u32 %s2944_s13, 3  ;;  %663 = vst [vmem:[#allocation2] sm:$0xff] (!%p1732_p0), %v2313_v1 }
  0x26   : > { %s2448_s19 = scalar_lea.vmem %s2935_s0, %s1772_s27  ;;  %s2946_s21 = smov (!%p634_p10, %s633_s21), 7 }
  0x27   : > { %p641_p11 = scmp.lt.s32.totalorder %s640_s26, 7  ;;  %s1773_s18 = sshll.u32 %s2946_s21, 7 }
  0x28   : > { %p646_p12 = scmp.lt.s32.totalorder %s645_s28, 7  ;;  %s2457_s2 = scalar_lea.vmem %s2906_s3, %s1773_s18 }
  0x29   : > { %p653_p13 = scmp.lt.s32.totalorder %s652_s1, 7  ;;  %s2948_s26 = smov (!%p641_p11, %s640_s26), 7 }
  0x2a   : > { %s2950_s28 = smov (!%p646_p12, %s645_s28), 7  ;;  %s643_s24 = scalar_lea.vmem %s2907_s4, %s2948_s26 }
  0x2b   : > { %s1774_s27 = sshll.u32 %s2950_s28, 6  ;;  %s2952_s1 = smov (!%p653_p13, %s652_s1), 7 }
  0x2c   : > { %s2468_s21 = scalar_lea.vmem %s2908_s5, %s1774_s27  ;;  %s655_s18 = scalar_lea.vmem %s2909_s6, %s2952_s1 }
  0x2d   : > { %662 = sbr.rel (%p1732_p0) target bundleno = 52 (0x34), region = 88 }
  0x34 PF: > { %v2215_v2 = vld [vmem:[%s2457_s2 + $0x40] sm:$0xff]   ;;  %v2217_v4 = vld [vmem:[%s2457_s2 + $0x48] sm:$0xff]   ;;  %v2219_v6 = vld [vmem:[%s2457_s2 + $0x50] sm:$0xff]   ;;  %v2314_v53 = vmov 0.0|0.0   ;;  %vm2315_vm0 = vmmov 0   ;;  %v2316_v54 = vmov 0.0  }
  0x35   : > { %v2216_v3 = vld [vmem:[%s2457_s2] sm:$0xff]   ;;  %1775 = vmatprep.subr.bf16.mxu0 %v2215_v2  ;;  %v2218_v5 = vld [vmem:[%s2457_s2 + $0x8] sm:$0xff]   ;;  %v2220_v7 = vld [vmem:[%s2457_s2 + $0x10] sm:$0xff]   ;;  %vm1003_vm1 = vcmask 261120   ;;  %s1077_s23 = scalar_lea.vmem [#allocation2], %s2452_s20  ;;  %p1764_p1 = scmp.ne.s32.totalorder %s2429_s12, 20 }
  0x36   : > { %1776 = vmatpush3.bf16.msra.mxu0 %v2216_v3  ;;  %v2221_v8 = vld [vmem:[%s2457_s2 + $0x58] sm:$0xff]   ;;  %v2223_v10 = vld [vmem:[%s2457_s2 + $0x60] sm:$0xff]   ;;  %v2225_v12 = vld [vmem:[%s2457_s2 + $0x68] sm:$0xff]   ;;  %vm2318_vm2 = vmmov (!%p1764_p1), 0   ;;  %s2937_s27 = sld [smem:[#allocation14_spill]] (!%p1764_p1)  ;;  %vm1396_vm3 = vcmask (!%p1764_p1), 7168  }
  0x37   : > { %1777 = vmatprep.subr.bf16.mxu0 %v2217_v4  ;;  %v2222_v9 = vld [vmem:[%s2457_s2 + $0x18] sm:$0xff]   ;;  %v2224_v11 = vld [vmem:[%s2457_s2 + $0x20] sm:$0xff]   ;;  %v2226_v14 = vld [vmem:[%s2457_s2 + $0x28] sm:$0xff]   ;;  %vm1603_vm4 = vcmask (!%p1764_p1), 24576   ;;  %s2939_s13 = sld [smem:[#allocation16_spill]] (!%p1764_p1) }
  0x38   : > { %v2233_v13 = vld [vmem:[%s2448_s19 + $0x4] ss:$8 sps:$4 sm:$0xff]   ;;  %v2227_v15 = vld [vmem:[%s2457_s2 + $0x70] sm:$0xff]   ;;  %v2229_v20 = vld [vmem:[%s2457_s2 + $0x78] sm:$0xff]  }
  0x39   : > { %855 = vmatprep.mubr.bf16.mxu0 %v2233_v13  ;;  %v2237_v16 = vld [vmem:[%s2468_s21] sm:$0xff]   ;;  %v2238_v17 = vld [vmem:[%s2468_s21 + $0x8] sm:$0xff]   ;;  %v2228_v18 = vld [vmem:[%s2457_s2 + $0x30] sm:$0xff]  }
  0x3a   : > { %1778 = vmatpush3.bf16.msra.mxu0 %v2218_v5  ;;  %1886 = vmatprep.subr.bf16.mxu1 %v2237_v16  ;;  %v2239_v19 = vld [vmem:[%s2468_s21 + $0x10] sm:$0xff]   ;;  %v2230_v21 = vld [vmem:[%s2457_s2 + $0x38] sm:$0xff]   ;;  %v2231_v22 = vld [vmem:[%s2448_s19] ss:$8 sps:$4 sm:$0xff]  }
  0x3b   : > { %1779 = vmatprep.subr.bf16.mxu0 %v2219_v6  ;;  %1887 = vmatpush3.bf16.msra.mxu1 %v2237_v16  ;;  %v2234_v23 = vld [vmem:[%s2448_s19 + $0x14] ss:$8 sps:$4 sm:$0xff]   ;;  %v2236_v24 = vld [vmem:[%s2448_s19 + $0x10] ss:$8 sps:$4 sm:$0xff]   ;;  %v2241_v26 = vld [vmem:[%s2468_s21 + $0x20] sm:$0xff]   ;;  %s2938_s19 = sld [smem:[#allocation15_spill]] (!%p1764_p1) }
  0x3c   : > { %1888 = vmatprep.subr.bf16.mxu1 %v2238_v17  ;;  %v2240_v25 = vld [vmem:[%s2468_s21 + $0x18] sm:$0xff]   ;;  %v2242_v27 = vld [vmem:[%s2468_s21 + $0x28] sm:$0xff]   ;;  %v2243_v28 = vld [vmem:[%s2468_s21 + $0x30] sm:$0xff]  }
  0x3d   : > { %v2244_v29 = vld [vmem:[%s2468_s21 + $0x38] sm:$0xff]   ;;  %v1733_v32 = vld [vmem:[%s643_s24] ss:$0 sm:$0xff]  ;;  %v1088_v13 = vld [vmem:[%s2910_s7 + $0x10] sm:$0xff] (!%p1764_p1) }
  0x3e   : > { %1780 = vmatpush3.bf16.msra.mxu0 %v2220_v7  ;;  %v1754_v55 = vld [vmem:[%s655_s18] ss:$0 sm:$0xff]  ;;  %v1089_v16 = vld [vmem:[%s2910_s7 + $0x18] sm:$0xff] (!%p1764_p1) }
  0x3f   : > { %1781 = vmatprep.subr.bf16.mxu0 %v2221_v8  ;;  %1889 = vmatpush3.bf16.msra.mxu1 %v2238_v17  ;;  %v1002_v6 = vld [vmem:[%s625_s25] sm:$0x1]  ;;  %v2319_v17 = vmov (!%p1764_p1), 0.0  }
  0x40   : > { %1890 = vmatprep.subr.bf16.mxu1 %v2239_v19  ;;  %v1078_v7 = vld [vmem:[%s1077_s23] sm:$0x1] }
  0x42   : > { %1782 = vmatpush3.bf16.msra.mxu0 %v2222_v9 }
  0x43   : > { %1783 = vmatprep.subr.bf16.mxu0 %v2223_v10  ;;  %1891 = vmatpush3.bf16.msra.mxu1 %v2239_v19  ;;  %v1090_v19 = vld [vmem:[%s2910_s7 + $0x20] sm:$0xff] (!%p1764_p1) }
  0x44   : > { %1892 = vmatprep.subr.bf16.mxu1 %v2240_v25 }
  0x46   : > { %1784 = vmatpush3.bf16.msra.mxu0 %v2224_v11  ;;  %v1086_v11 = vld [vmem:[%s2910_s7] sm:$0xff] (!%p1764_p1) }
  0x47   : > { %1785 = vmatprep.subr.bf16.mxu0 %v2225_v12  ;;  %1893 = vmatpush3.bf16.msra.mxu1 %v2240_v25  ;;  %v1087_v12 = vld [vmem:[%s2910_s7 + $0x8] sm:$0xff] (!%p1764_p1)  ;;  %v1180_v25 = vld [vmem:[%s2912_s9] sm:$0xff] (!%p1764_p1) }
  0x48   : > { %1894 = vmatprep.subr.bf16.mxu1 %v2241_v26 }
  0x4a   : > { %1786 = vmatpush3.bf16.msra.mxu0 %v2226_v14  ;;  %v2317_v14 = vmov (!%p1764_p1), 0.0|0.0  }
  0x4b   : > { %1787 = vmatprep.subr.bf16.mxu0 %v2227_v15  ;;  %1895 = vmatpush3.bf16.msra.mxu1 %v2241_v26  ;;  %v2064_v15 = vpack.c.bf16 (!%p1764_p1), %v1087_v12, %v1086_v11  ;;  %v1182_v26 = vld [vmem:[%s2912_s9 + $0x10] sm:$0xff] (!%p1764_p1)  ;;  %v1204_v12 = vld [vmem:[%s2912_s9 + $0xc0] sm:$0xff] (!%p1764_p1) }
  0x4c   : > { %1896 = vmatprep.subr.bf16.mxu1 %v2242_v27 }
  0x4e   : > { %1788 = vmatpush3.bf16.msra.mxu0 %v2228_v18  ;;  %v2067_v18 = vpack.c.bf16 (!%p1764_p1), %v1089_v16, %v1088_v13  ;;  %v1206_v13 = vld [vmem:[%s2912_s9 + $0xd0] sm:$0xff] (!%p1764_p1) }
  0x4f   : > { %1789 = vmatprep.subr.bf16.mxu0 %v2229_v20  ;;  %1897 = vmatpush3.bf16.msra.mxu1 %v2242_v27  ;;  %v1091_v20 = vld [vmem:[%s2910_s7 + $0x28] sm:$0xff] (!%p1764_p1) }
  0x50   : > { %1898 = vmatprep.subr.bf16.mxu1 %v2243_v28  ;;  %v2070_v27 = vpack.c.bf16 (!%p1764_p1), %v1091_v20, %v1090_v19  ;;  %v1211_v19 = vld [vmem:[%s2912_s9 + $0xf8] sm:$0xff] (!%p1764_p1) }
  0x52   : > { %1790 = vmatpush3.bf16.msra.mxu0 %v2230_v21  ;;  %v1181_v21 = vld [vmem:[%s2912_s9 + $0x8] sm:$0xff] (!%p1764_p1) }
  0x53   : > { %1899 = vmatpush3.bf16.msra.mxu1 %v2243_v28  ;;  %2063 = vmatprep.subr.bf16.mxu0 (!%p1764_p1), %v2317_v14 }
  0x54   : > { %1900 = vmatprep.subr.bf16.mxu1 %v2244_v29 }
  0x55   : > { %856 = vmatmul.mubr.bf16.vlgmr.msra.gmra.mrb[0].mxu0 %v2231_v22  ;;  %v1092_v22 = vld [vmem:[%s2910_s7 + $0x30] sm:$0xff] (!%p1764_p1) }
  0x56   : > { %863 = vmatprep.mubr.bf16.mxu0 %v2234_v23  ;;  %2065 = vmatpush3.bf16.msra.mxu0 (!%p1764_p1), %v2064_v15  ;;  %v1093_v23 = vld [vmem:[%s2910_s7 + $0x38] sm:$0xff] (!%p1764_p1)  ;;  %v2113_v15 = vpack.c.bf16 (!%p1764_p1), %v1206_v13, %v1204_v12  ;;  %v1432_v12 = vld [vmem:[%s2937_s27 + $0x20] sm:$0xff] (!%p1764_p1)  ;;  %v1433_v13 = vld [vmem:[%s2937_s27 + $0x28] sm:$0xff] (!%p1764_p1) }
  0x57   : > { %1901 = vmatpush3.bf16.msra.mxu1 %v2244_v29  ;;  %2066 = vmatprep.subr.bf16.mxu0 (!%p1764_p1), %v2317_v14  ;;  %v2089_v29 = vpack.c.bf16 (!%p1764_p1), %v1182_v26, %v1180_v25 }
  0x58   : > { %2057 = vmatprep.subr.bf16.mxu1 %v2314_v53 }
  0x5a   : > { %2068 = vmatpush3.bf16.msra.mxu0 (!%p1764_p1), %v2067_v18  ;;  %v1209_v18 = vld [vmem:[%s2912_s9 + $0xe8] sm:$0xff] (!%p1764_p1) }
  0x5b   : > { %2069 = vmatprep.subr.bf16.mxu0 (!%p1764_p1), %v2317_v14  ;;  %v2115_v20 = vpack.c.bf16 (!%p1764_p1), %v1211_v19, %v1209_v18  ;;  %v1435_v18 = vld [vmem:[%s2937_s27 + $0x38] sm:$0xff] (!%p1764_p1) }
  0x5d   : > { %864 = vmatmul.mubr.bf16.gmra.mrb[4].mxu0 %v2236_v24  ;;  %v1183_v24 = vld [vmem:[%s2912_s9 + $0x18] sm:$0xff] (!%p1764_p1) }
  0x5e   : > { %1949 = vmatprep.mubr.msk.f32.mxu0 (!%p1764_p1), %vm2318_vm2, %v2319_v17  ;;  %v2087_v28 = vpack.c.bf16 (!%p1764_p1), %v1183_v24, %v1181_v21  ;;  %2071 = vmatpush3.bf16.msra.mxu0 (!%p1764_p1), %v2070_v27  ;;  %v1208_v21 = vld [vmem:[%s2912_s9 + $0xe0] sm:$0xff] (!%p1764_p1) }
  0x5f   : > { %2072 = vmatprep.subr.bf16.mxu0 (!%p1764_p1), %v2317_v14  ;;  %v1765_v24 = vld [vmem:[%s2911_s8] ss:$0 sm:$0xff] (!%p1764_p1) }
 0x128   : > { %v1791_v30 = vpop.f32.mrb[0].mxu0 }
 0x129   : > { %v1792_v31 = vpop.f32.mrb[1].mxu0 }
 0x12a   : > { %v1793_v33 = vadd.f32 %v1792_v31, %v1791_v30  ;;  %v1794_v34 = vpop.f32.mrb[2].mxu0  ;;  %v1185_v30 = vld [vmem:[%s2912_s9 + $0x28] sm:$0xff] (!%p1764_p1)  ;;  %v1187_v31 = vld [vmem:[%s2912_s9 + $0x38] sm:$0xff] (!%p1764_p1) }
 0x12b   : > { %v1795_v35 = vpop.f32.mrb[3].mxu0 }
 0x12c   : > { %v1796_v36 = vadd.f32 %v1795_v35, %v1794_v34  ;;  %v858_v37 = vadd.f32 %v1793_v33, %v1733_v32  ;;  %v2091_v33 = vpack.c.bf16 (!%p1764_p1), %v1187_v31, %v1185_v30  ;;  %v1186_v34 = vld [vmem:[%s2912_s9 + $0x30] sm:$0xff] (!%p1764_p1)  ;;  %v1189_v35 = vld [vmem:[%s2912_s9 + $0x48] sm:$0xff] (!%p1764_p1) }
 0x12d   : > { %v1304_v30 = vld [vmem:[%s2914_s11 + $0x8] sm:$0xff] (!%p1764_p1) }
 0x12e   : > { %v861_v38 = vadd.f32 %v1796_v36, %v1733_v32  ;;  %v872_v40 = vmax.f32 %v858_v37, 0.0  ;;  %v1191_v36 = vld [vmem:[%s2912_s9 + $0x58] sm:$0xff] (!%p1764_p1) }
 0x130   : > { %v1797_v39 = vpop.f32.mrb[4].mxu0  ;;  %v873_v41 = vmax.f32 %v861_v38, 0.0  ;;  %v2073_v38 = vpack.c.bf16 (!%p1764_p1), %v1093_v23, %v1092_v22  ;;  %v1210_v22 = vld [vmem:[%s2912_s9 + $0xf0] sm:$0xff] (!%p1764_p1) }
 0x131   : > { %v1798_v42 = vpop.f32.mrb[5].mxu0  ;;  %v2117_v23 = vpack.c.bf16 (!%p1764_p1), %v1210_v22, %v1208_v21  ;;  %v1437_v21 = vld [vmem:[%s2937_s27 + $0x48] sm:$0xff] (!%p1764_p1) }
 0x132   : > { %v1799_v43 = vadd.f32 %v1798_v42, %v1797_v39  ;;  %v1800_v44 = vpop.f32.mrb[6].mxu0  ;;  %v876_v45 = vpack.c.bf16 %v873_v41, %v872_v40  ;;  %v1094_v39 = vld [vmem:[%s2910_s7 + $0x40] sm:$0xff] (!%p1764_p1)  ;;  %v2095_v40 = vpack.c.bf16 (!%p1764_p1), %v1191_v36, %v1189_v35  ;;  %v1190_v42 = vld [vmem:[%s2912_s9 + $0x50] sm:$0xff] (!%p1764_p1)  ;;  %2074 = vmatpush3.bf16.msra.mxu0 (!%p1764_p1), %v2073_v38  ;;  %v1308_v36 = vld [vmem:[%s2914_s11 + $0x28] sm:$0xff] (!%p1764_p1) }
 0x133   : > { %v1801_v46 = vpop.f32.mrb[7].mxu0  ;;  %v1188_v41 = vld [vmem:[%s2912_s9 + $0x40] sm:$0xff] (!%p1764_p1)  ;;  %2075 = vmatprep.subr.bf16.mxu0 (!%p1764_p1), %v2317_v14  ;;  %v1309_v38 = vld [vmem:[%s2914_s11 + $0x30] sm:$0xff] (!%p1764_p1) }
 0x134   : > { %v866_v47 = vadd.f32 %v1799_v43, %v1733_v32  ;;  %v1802_v48 = vadd.f32 %v1801_v46, %v1800_v44  ;;  %1902 = vmatprep.mubr.bf16.mxu1 %v876_v45  ;;  %v1095_v43 = vld [vmem:[%s2910_s7 + $0x48] sm:$0xff] (!%p1764_p1)  ;;  %v1195_v45 = vld [vmem:[%s2912_s9 + $0x78] sm:$0xff] (!%p1764_p1)  ;;  %v2097_v46 = vpack.c.bf16 (!%p1764_p1), %v1190_v42, %v1188_v41  ;;  %v1307_v35 = vld [vmem:[%s2914_s11 + $0x20] sm:$0xff] (!%p1764_p1) }
 0x135   : > { %v1193_v44 = vld [vmem:[%s2912_s9 + $0x68] sm:$0xff] (!%p1764_p1)  ;;  %v1311_v41 = vld [vmem:[%s2914_s11 + $0x40] sm:$0xff] (!%p1764_p1) }
 0x136   : > { %v869_v49 = vadd.f32 %v1802_v48, %v1733_v32  ;;  %v874_v50 = vmax.f32 %v866_v47, 0.0  ;;  %v1184_v32 = vld [vmem:[%s2912_s9 + $0x20] sm:$0xff] (!%p1764_p1)  ;;  %v2076_v47 = vpack.c.bf16 (!%p1764_p1), %v1095_v43, %v1094_v39  ;;  %v1096_v48 = vld [vmem:[%s2910_s7 + $0x50] sm:$0xff] (!%p1764_p1)  ;;  %v1310_v39 = vld [vmem:[%s2914_s11 + $0x38] sm:$0xff] (!%p1764_p1) }
 0x137   : > { %v2093_v37 = vpack.c.bf16 (!%p1764_p1), %v1186_v34, %v1184_v32  ;;  %v1305_v32 = vld [vmem:[%s2914_s11 + $0x10] sm:$0xff] (!%p1764_p1)  ;;  %v1312_v42 = vld [vmem:[%s2914_s11 + $0x48] sm:$0xff] (!%p1764_p1) }
 0x138   : > { %v875_v51 = vmax.f32 %v869_v49, 0.0  ;;  %v2099_v49 = vpack.c.bf16 (!%p1764_p1), %v1195_v45, %v1193_v44  ;;  %2077 = vmatpush3.bf16.msra.mxu0 (!%p1764_p1), %v2076_v47  ;;  %v2132_v43 = vpack.c.bf16 (!%p1764_p1), %v1312_v42, %v1311_v41  ;;  %v1313_v44 = vld [vmem:[%s2914_s11 + $0x50] sm:$0xff] (!%p1764_p1)  ;;  %v1314_v45 = vld [vmem:[%s2914_s11 + $0x58] sm:$0xff] (!%p1764_p1)  ;;  %v1315_v47 = vld [vmem:[%s2914_s11 + $0x60] sm:$0xff] (!%p1764_p1) }
 0x139   : > { %2078 = vmatprep.subr.bf16.mxu0 (!%p1764_p1), %v2317_v14 }
 0x13a   : > { %v877_v52 = vpack.c.bf16 %v875_v51, %v874_v50  ;;  %v1192_v50 = vld [vmem:[%s2912_s9 + $0x60] sm:$0xff] (!%p1764_p1)  ;;  %v1194_v51 = vld [vmem:[%s2912_s9 + $0x70] sm:$0xff] (!%p1764_p1) }
 0x13c   : > { %1903 = vmatmul.mubr.bf16.vlgmr.msra.gmra.mrb[0].mxu1 %v877_v52  ;;  %v1097_v52 = vld [vmem:[%s2910_s7 + $0x58] sm:$0xff] (!%p1764_p1) }
 0x13d   : > { %1914 = vmatprep.mubr.msk.f32.mxu1 %vm2315_vm0, %v2316_v54  ;;  %v1199_v54 = vld [vmem:[%s2912_s9 + $0x98] sm:$0xff] (!%p1764_p1) }
 0x20f   : > { %v1904_v56 = vpop.f32.mrb[0].mxu1 }
 0x210   : > { %v992_v57 = vadd.f32 %v1904_v56, %v1754_v55  ;;  %v983_v58 = vpop.f32.mrb[1].mxu1  ;;  %v2079_v56 = vpack.c.bf16 (!%p1764_p1), %v1097_v52, %v1096_v48  ;;  %v1316_v48 = vld [vmem:[%s2914_s11 + $0x68] sm:$0xff] (!%p1764_p1) }
 0x211   : > { %v984_v59 = vadd.f32 %v1754_v55, %v983_v58  ;;  %v1905_v60 = vpop.f32.mrb[2].mxu1 }
 0x212   : > { %v995_v61 = vadd.f32 %v1905_v60, %v1754_v55  ;;  %v986_v62 = vpop.f32.mrb[3].mxu1  ;;  %v1000_v0 = vmax.f32 %v992_v57, 0.0  ;;  %v1098_v57 = vld [vmem:[%s2910_s7 + $0x60] sm:$0xff] (!%p1764_p1)  ;;  %v1198_v60 = vld [vmem:[%s2912_s9 + $0x90] sm:$0xff] (!%p1764_p1)  ;;  %2080 = vmatpush3.bf16.msra.mxu0 (!%p1764_p1), %v2079_v56 }
 0x213   : > { %v987_v63 = vadd.f32 %v1754_v55, %v986_v62  ;;  %v998_v2 = vmax.f32 %v984_v59, 0.0  ;;  %v2101_v55 = vpack.c.bf16 (!%p1764_p1), %v1194_v51, %v1192_v50  ;;  %v1196_v59 = vld [vmem:[%s2912_s9 + $0x80] sm:$0xff] (!%p1764_p1)  ;;  %v1201_v62 = vld [vmem:[%s2912_s9 + $0xa8] sm:$0xff] (!%p1764_p1)  ;;  %2081 = vmatprep.subr.bf16.mxu0 (!%p1764_p1), %v2317_v14  ;;  %v1317_v50 = vld [vmem:[%s2914_s11 + $0x70] sm:$0xff] (!%p1764_p1) }
 0x214   : > { %v1001_v1 = vmax.f32 %v995_v61, 0.0  ;;  %v1099_v61 = vld [vmem:[%s2910_s7 + $0x68] sm:$0xff] (!%p1764_p1)  ;;  %v1318_v51 = vld [vmem:[%s2914_s11 + $0x78] sm:$0xff] (!%p1764_p1)  ;;  %v1212_v56 = vld [vmem:[%s2913_s10] sm:$0x3] (!%p1764_p1) }
 0x215   : > { %v999_v3 = vmax.f32 %v987_v63, 0.0  ;;  %v1203_v63 = vld [vmem:[%s2912_s9 + $0xb8] sm:$0xff] (!%p1764_p1)  ;;  %v2141_v52 = vpack.c.bf16 (!%p1764_p1), %v1318_v51, %v1317_v50  ;;  %v1440_v51 = vld [vmem:[%s2937_s27 + $0x60] sm:$0xff] (!%p1764_p1) }
 0x216   : > { %v2061_v4 = vpack.c.bf16 %v1001_v1, %v1000_v0  ;;  %v2105_v0 = vpack.c.bf16 (!%p1764_p1), %v1198_v60, %v1196_v59  ;;  %v2082_v1 = vpack.c.bf16 (!%p1764_p1), %v1099_v61, %v1098_v57 }
 0x217   : > { %v2058_v5 = vpack.c.bf16 %v999_v3, %v998_v2  ;;  %v1100_v2 = vld [vmem:[%s2910_s7 + $0x70] sm:$0xff] (!%p1764_p1)  ;;  %v2107_v3 = vpack.c.bf16 (!%p1764_p1), %v1203_v63, %v1201_v62 }
 0x218   : > { %2083 = vmatpush3.bf16.msra.mxu0 (!%p1764_p1), %v2082_v1 }
 0x219   : > { %2059 = vmatpush3.bf16.msra.mxu1 %v2058_v5  ;;  %v1202_v5 = vld [vmem:[%s2912_s9 + $0xb0] sm:$0xff] (!%p1764_p1)  ;;  %2084 = vmatprep.subr.bf16.mxu0 (!%p1764_p1), %v2317_v14 }
 0x21a   : > { %2060 = vmatprep.subr.bf16.mxu1 %v2314_v53  ;;  %v1197_v53 = vld [vmem:[%s2912_s9 + $0x88] sm:$0xff] (!%p1764_p1) }
 0x21b   : > { %v2103_v58 = vpack.c.bf16 (!%p1764_p1), %v1199_v54, %v1197_v53  ;;  %v1214_v53 = vlaneseq (!%p1764_p1) }
 0x21d   : > { %2062 = vmatpush3.bf16.msra.mxu1 %v2061_v4  ;;  %v1200_v4 = vld [vmem:[%s2912_s9 + $0xa0] sm:$0xff] (!%p1764_p1)  ;;  %v1215_v54 = vshrl.u32 (!%p1764_p1), %v1214_v53, 7 }
 0x21e   : > { %2088 = vmatprep.subr.bf16.mxu1 (!%p1764_p1), %v2087_v28 }
 0x21f   : > { %v1216_v62 = vsub.s32 (!%p1764_p1), 0, %v1215_v54 }
 0x220   : > { %1915 = vmatmul.mubr.msk.f32.vlgmr.msra.gmra.mrb[4].mxu1 %vm1003_vm1, %v1002_v6  ;;  %v1101_v6 = vld [vmem:[%s2910_s7 + $0x78] sm:$0xff] (!%p1764_p1) }
 0x221   : > { %1288 = vmatprep.mubr.f32.mxu1 (!%p1764_p1), %v2319_v17  ;;  %2090 = vmatpush1.bf16.msra.mxu1 (!%p1764_p1), %v2089_v29  ;;  %v1303_v29 = vld [vmem:[%s2914_s11] sm:$0xff] (!%p1764_p1)  ;;  %v1217_v63 = vrot.slane (!%p1764_p1), %v1212_v56, %v1216_v62 }
 0x222   : > { %2092 = vmatprep.subr.bf16.mxu1 (!%p1764_p1), %v2091_v33  ;;  %v2120_v31 = vpack.c.bf16 (!%p1764_p1), %v1304_v30, %v1303_v29  ;;  %v1306_v33 = vld [vmem:[%s2914_s11 + $0x18] sm:$0xff] (!%p1764_p1) }
 0x223   : > { %v2123_v34 = vpack.c.bf16 (!%p1764_p1), %v1306_v33, %v1305_v32 }
 0x225   : > { %2094 = vmatpush1.bf16.msra.mxu1 (!%p1764_p1), %v2093_v37  ;;  %v2126_v37 = vpack.c.bf16 (!%p1764_p1), %v1308_v36, %v1307_v35 }
 0x226   : > { %2096 = vmatprep.subr.bf16.mxu1 (!%p1764_p1), %v2095_v40  ;;  %v2129_v40 = vpack.c.bf16 (!%p1764_p1), %v1310_v39, %v1309_v38 }
 0x229   : > { %2098 = vmatpush1.bf16.msra.mxu1 (!%p1764_p1), %v2097_v46  ;;  %v2135_v46 = vpack.c.bf16 (!%p1764_p1), %v1314_v45, %v1313_v44 }
 0x22a   : > { %2100 = vmatprep.subr.bf16.mxu1 (!%p1764_p1), %v2099_v49  ;;  %v2138_v49 = vpack.c.bf16 (!%p1764_p1), %v1316_v48, %v1315_v47  ;;  %v1438_v48 = vld [vmem:[%s2937_s27 + $0x50] sm:$0xff] (!%p1764_p1) }
 0x22d   : > { %2102 = vmatpush1.bf16.msra.mxu1 (!%p1764_p1), %v2101_v55  ;;  %v1220_v55 = vsub.s32 (!%p1764_p1), 1, %v1215_v54  ;;  %v1442_v54 = vld [vmem:[%s2937_s27 + $0x70] sm:$0xff] (!%p1764_p1) }
 0x22e   : > { %2104 = vmatprep.subr.bf16.mxu1 (!%p1764_p1), %v2103_v58 }
 0x22f   : > { %v1221_v57 = vrot.slane (!%p1764_p1), %v1212_v56, %v1220_v55  ;;  %v1443_v55 = vld [vmem:[%s2937_s27 + $0x78] sm:$0xff] (!%p1764_p1) }
 0x230   : > { %v2165_v56 = vpack.c.bf16 (!%p1764_p1), %v1443_v55, %v1442_v54 }
 0x231   : > { %2106 = vmatpush1.bf16.msra.mxu1 (!%p1764_p1), %v2105_v0 }
 0x232   : > { %2108 = vmatprep.subr.bf16.mxu1 (!%p1764_p1), %v2107_v3 }
 0x2f0   : > { %1084 = sbr.rel (%p1764_p1) target bundleno = 2380 (0x94c), region = 92 }
 0x2f3   : > { %v1073_v8 = vpop.f32.mrb[4].mxu1 }
 0x2f4   : > { %v1079_v9 = vadd.f32 %v1078_v7, %v1073_v8  ;;  %v1916_v10 = vpop.f32.mrb[5].mxu1  ;;  %v1205_v7 = vld [vmem:[%s2912_s9 + $0xc8] sm:$0xff] (!%p1764_p1)  ;;  %v1207_v8 = vld [vmem:[%s2912_s9 + $0xd8] sm:$0xff] (!%p1764_p1) }
 0x2f5   : > { %v2085_v10 = vpack.c.bf16 (!%p1764_p1), %v1101_v6, %v1100_v2  ;;  %v2111_v11 = vpack.c.bf16 (!%p1764_p1), %v1207_v8, %v1205_v7  ;;  %v2320_v6 = vmov (!%p1764_p1), 0   ;;  %v1428_v7 = vld [vmem:[%s2937_s27] sm:$0xff] (!%p1764_p1)  ;;  %v1429_v8 = vld [vmem:[%s2937_s27 + $0x8] sm:$0xff] (!%p1764_p1) }
 0x2f6   : > { %1080 = vst [vmem:[%s1077_s23] sm:$0x1] %v1079_v9  ;;  %v2109_v9 = vpack.c.bf16 (!%p1764_p1), %v1202_v5, %v1200_v4  ;;  %2245 = vset.pattern.permute.xlu0 (!%p1764_p1), %v2320_v6  ;;  %v1525_v6 = vld [vmem:[%s2917_s15 + $0x48] sm:$0xff] (!%p1764_p1) }
 0x2f7   : > { %2086 = vmatpush3.bf16.msra.mxu0 %v2085_v10  ;;  %v2144_v10 = vpack.c.bf16 %v1429_v8, %v1428_v7  ;;  %v1526_v8 = vld [vmem:[%s2917_s15 + $0x50] sm:$0xff] }
 0x2f8   : > { %2110 = vmatpush1.bf16.msra.mxu1 %v2109_v9  ;;  %2119 = vmatprep.subr.bf16.mxu0 %v2317_v14  ;;  %v1430_v9 = vld [vmem:[%s2937_s27 + $0x10] sm:$0xff] }
 0x2f9   : > { %2112 = vmatprep.subr.bf16.mxu1 %v2111_v11  ;;  %v1431_v11 = vld [vmem:[%s2937_s27 + $0x18] sm:$0xff] }
 0x2fc   : > { %2114 = vmatpush1.bf16.msra.mxu1 %v2113_v15  ;;  %v2150_v15 = vpack.c.bf16 %v1433_v13, %v1432_v12 }
 0x2fd   : > { %v1085_v16 = vld [vmem:[#allocation2] sm:$0xff]  ;;  %2116 = vmatprep.subr.bf16.mxu1 %v2115_v20 }
 0x2fe   : > { %1950 = vmatmul.mubr.f32.vlgmr.msra.gmra.mrb[0].mxu0 %v1085_v16  ;;  %v1434_v16 = vld [vmem:[%s2937_s27 + $0x30] sm:$0xff]  ;;  %v1436_v20 = vld [vmem:[%s2937_s27 + $0x40] sm:$0xff] }
 0x2ff   : > { %1984 = vmatprep.mubr.msk.f32.mxu0 %vm2318_vm2, %v2319_v17  ;;  %2121 = vmatpush3.bf16.msra.mxu0 %v2120_v31  ;;  %v2153_v19 = vpack.c.bf16 %v1435_v18, %v1434_v16  ;;  %v2156_v22 = vpack.c.bf16 %v1437_v21, %v1436_v20 }
 0x300   : > { %2118 = vmatpush1.bf16.msra.mxu1 %v2117_v23  ;;  %2122 = vmatprep.subr.bf16.mxu0 %v2317_v14  ;;  %v1767_v23 = vld [vmem:[#allocation5] ss:$0 sm:$0xff] }
 0x301   : > { %2143 = vmatprep.subr.bf16.mxu1 %v2317_v14 }
 0x303   : > { %2124 = vmatpush3.bf16.msra.mxu0 %v2123_v34 }
 0x304   : > { %2125 = vmatprep.subr.bf16.mxu0 %v2317_v14 }
 0x307   : > { %2127 = vmatpush3.bf16.msra.mxu0 %v2126_v37 }
 0x308   : > { %2128 = vmatprep.subr.bf16.mxu0 %v2317_v14 }
 0x30b   : > { %2130 = vmatpush3.bf16.msra.mxu0 %v2129_v40 }
 0x30c   : > { %2131 = vmatprep.subr.bf16.mxu0 %v2317_v14 }
 0x30f   : > { %2133 = vmatpush3.bf16.msra.mxu0 %v2132_v43 }
 0x310   : > { %2134 = vmatprep.subr.bf16.mxu0 %v2317_v14 }
 0x313   : > { %2136 = vmatpush3.bf16.msra.mxu0 %v2135_v46 }
 0x314   : > { %2137 = vmatprep.subr.bf16.mxu0 %v2317_v14 }
 0x317   : > { %2139 = vmatpush3.bf16.msra.mxu0 %v2138_v49  ;;  %v1439_v49 = vld [vmem:[%s2937_s27 + $0x58] sm:$0xff] }
 0x318   : > { %2140 = vmatprep.subr.bf16.mxu0 %v2317_v14  ;;  %v2159_v50 = vpack.c.bf16 %v1439_v49, %v1438_v48 }
 0x31b   : > { %2142 = vmatpush3.bf16.msra.mxu0 %v2141_v52  ;;  %v1441_v52 = vld [vmem:[%s2937_s27 + $0x68] sm:$0xff] }
 0x31c   : > { %2167 = vmatprep.subr.bf16.mxu0 %v2317_v14  ;;  %v2162_v53 = vpack.c.bf16 %v1441_v52, %v1440_v51 }
 0x3d1   : > { %v1175_v25 = vpop.f32.mrb[0].mxu0 }
 0x3d2   : > { %v2684_v26 = vadd.f32 %v1765_v24, %v1175_v25  ;;  %v1951_v27 = vpop.f32.mrb[1].mxu0 }
 0x3d4   : > { %v1179_v28 = vmax.f32 %v2684_v26, 0.0  ;;  %v1444_v26 = vld [vmem:[%s2916_s14] sm:$0x1] }
 0x3d6   : > { %1289 = vmatmul.mubr.f32.vlgmr.msra.gmra.mrb[0].mxu1 %v1179_v28 }
 0x3d7   : > { %2019 = vmatprep.mubr.msk.f32.mxu1 %vm2318_vm2, %v2319_v17  ;;  %2145 = vmatpush3.bf16.msra.mxu1 %v2144_v10 }
 0x3d8   : > { %2146 = vmatprep.subr.bf16.mxu1 %v2317_v14 }
 0x4a9   : > { %v1290_v58 = vpop.f32.mrb[0].mxu1 }
 0x4aa   : > { %v1292_v59 = vpop.f32.mrb[1].mxu1  ;;  %v1291_v0 = vadd.f32 %v1290_v58, %v1217_v63  ;;  %v1517_v58 = vld [vmem:[%s2917_s15 + $0x8] sm:$0xff]  ;;  %v1520_v63 = vld [vmem:[%s2917_s15 + $0x20] sm:$0xff] }
 0x4ab   : > { %v1293_v60 = vadd.f32 %v1292_v59, %v1221_v57  ;;  %v1516_v57 = vld [vmem:[%s2917_s15] sm:$0xff]  ;;  %v1518_v59 = vld [vmem:[%s2917_s15 + $0x10] sm:$0xff] }
 0x4ad   : > { %v1766_v61 = vmul.f32 -1.442695, %v1293_v60  ;;  %v2168_v60 = vpack.c.bf16 %v1517_v58, %v1516_v57 }
 0x4af   : > { %2246 = vpow2.f32 %v1766_v61  ;;  %v1519_v61 = vld [vmem:[%s2917_s15 + $0x18] sm:$0xff] }
 0x4b0   : > { %2248 = vtanh.f32 %v1291_v0  ;;  %v2171_v62 = vpack.c.bf16 %v1519_v61, %v1518_v59  ;;  %v1521_v0 = vld [vmem:[%s2917_s15 + $0x28] sm:$0xff] }
 0x4b9   : > { %v2247_v1 = vpop.eup %2246 }
 0x4ba   : > { %v1299_v2 = vadd.f32 1.0, %v2247_v1  ;;  %v2249_v3 = vpop.eup %2248  ;;  %v2174_v1 = vpack.c.bf16 %v1521_v0, %v1520_v63 }
 0x4bc   : > { %2250 = vrcp.f32 %v1299_v2  ;;  %v1522_v2 = vld [vmem:[%s2917_s15 + $0x30] sm:$0xff] }
 0x4c6   : > { %v2251_v4 = vpop.eup %2250 }
 0x4c7   : > { %v1302_v5 = vmul.f32 %v2251_v4, %v2249_v3  ;;  %v1523_v3 = vld [vmem:[%s2917_s15 + $0x38] sm:$0xff] }
 0x4c8   : > { %v2177_v4 = vpack.c.bf16 %v1523_v3, %v1522_v2 }
 0x4c9   : > { %1985 = vmatmul.mubr.f32.vlgmr.msra.gmra.mrb[2].mxu0 %v1302_v5  ;;  %v1524_v5 = vld [vmem:[%s2917_s15 + $0x40] sm:$0xff] }
 0x4ca   : > { %2054 = vmatprep.mubr.msk.f32.mxu0 %vm2318_vm2, %v2319_v17  ;;  %v2147_v17 = vpack.c.bf16 %v1431_v11, %v1430_v9  ;;  %2169 = vmatpush3.bf16.msra.mxu0 %v2168_v60  ;;  %v2180_v7 = vpack.c.bf16 %v1525_v6, %v1524_v5  ;;  %v1527_v9 = vld [vmem:[%s2917_s15 + $0x58] sm:$0xff]  ;;  %v1528_v11 = vld [vmem:[%s2917_s15 + $0x60] sm:$0xff] }
 0x4cb   : > { %2170 = vmatprep.subr.bf16.mxu0 %v2317_v14  ;;  %v2183_v10 = vpack.c.bf16 %v1527_v9, %v1526_v8 }
 0x4cc   : > { %2148 = vmatpush3.bf16.msra.mxu1 %v2147_v17  ;;  %v1529_v17 = vld [vmem:[%s2917_s15 + $0x68] sm:$0xff] }
 0x4cd   : > { %2149 = vmatprep.subr.bf16.mxu1 %v2317_v14  ;;  %v2186_v12 = vpack.c.bf16 %v1529_v17, %v1528_v11 }
 0x4ce   : > { %2172 = vmatpush3.bf16.msra.mxu0 %v2171_v62 }
 0x4cf   : > { %2173 = vmatprep.subr.bf16.mxu0 %v2317_v14 }
 0x4d0   : > { %2151 = vmatpush3.bf16.msra.mxu1 %v2150_v15 }
 0x4d1   : > { %2152 = vmatprep.subr.bf16.mxu1 %v2317_v14 }
 0x4d2   : > { %2175 = vmatpush3.bf16.msra.mxu0 %v2174_v1 }
 0x4d3   : > { %2176 = vmatprep.subr.bf16.mxu0 %v2317_v14 }
 0x4d4   : > { %2154 = vmatpush3.bf16.msra.mxu1 %v2153_v19 }
 0x4d5   : > { %2155 = vmatprep.subr.bf16.mxu1 %v2317_v14 }
 0x4d6   : > { %2178 = vmatpush3.bf16.msra.mxu0 %v2177_v4 }
 0x4d7   : > { %2179 = vmatprep.subr.bf16.mxu0 %v2317_v14 }
 0x4d8   : > { %2157 = vmatpush3.bf16.msra.mxu1 %v2156_v22 }
 0x4d9   : > { %2158 = vmatprep.subr.bf16.mxu1 %v2317_v14 }
 0x4da   : > { %2181 = vmatpush3.bf16.msra.mxu0 %v2180_v7 }
 0x4db   : > { %2182 = vmatprep.subr.bf16.mxu0 %v2317_v14 }
 0x4dc   : > { %2160 = vmatpush3.bf16.msra.mxu1 %v2159_v50 }
 0x4dd   : > { %2161 = vmatprep.subr.bf16.mxu1 %v2317_v14 }
 0x4de   : > { %2184 = vmatpush3.bf16.msra.mxu0 %v2183_v10 }
 0x4df   : > { %2185 = vmatprep.subr.bf16.mxu0 %v2317_v14 }
 0x4e0   : > { %2163 = vmatpush3.bf16.msra.mxu1 %v2162_v53 }
 0x4e1   : > { %2164 = vmatprep.subr.bf16.mxu1 %v2317_v14 }
 0x4e2   : > { %2187 = vmatpush3.bf16.msra.mxu0 %v2186_v12 }
 0x4e3   : > { %2188 = vmatprep.subr.bf16.mxu0 %v2317_v14 }
 0x4e4   : > { %2166 = vmatpush3.bf16.msra.mxu1 %v2165_v56 }
 0x59c   : > { %v1392_v24 = vpop.f32.mrb[2].mxu0 }
 0x59d   : > { %v1393_v25 = vadd.f32 %v1767_v23, %v1392_v24  ;;  %v1986_v27 = vpop.f32.mrb[3].mxu0  ;;  %v1530_v23 = vld [vmem:[%s2917_s15 + $0x70] sm:$0xff]  ;;  %v1531_v24 = vld [vmem:[%s2917_s15 + $0x78] sm:$0xff] }
 0x59e   : > { %v2189_v14 = vpack.c.bf16 %v1531_v24, %v1530_v23 }
 0x59f   : > { %v1397_v29 = vsel %vm1396_vm3, %v1393_v25, -inf }
 0x5a0   : > { %v1398_v30 = vrot.slane %v1397_v29, 4  ;;  %2190 = vmatpush3.bf16.msra.mxu0 %v2189_v14 }
 0x5a2   : > { %v1399_v31 = vmax.f32 %v1397_v29, %v1398_v30  ;;  %v1532_v30 = vld [vmem:[%s2938_s19] sm:$0x1] }
 0x5a4   : > { %v1400_v32 = vrot.slane %v1399_v31, 2 }
 0x5a6   : > { %v1401_v33 = vmax.f32 %v1399_v31, %v1400_v32 }
 0x5a8   : > { %v1402_v34 = vrot.slane %v1401_v33, 1 }
 0x5aa   : > { %v1403_v35 = vmax.f32 %v1401_v33, %v1402_v34 }
 0x5ac   : > { %v1404_v36 = vsub.f32 %v1393_v25, %v1403_v35 }
 0x5ae   : > { %v1405_v37 = vmul.f32 1.442695, %v1404_v36 }
 0x5b0   : > { %2252 = vpow2.f32 %v1405_v37 }
 0x5ba   : > { %v2253_v38 = vpop.eup %2252 }
 0x5bb   : > { %v1407_v39 = vsel %vm1396_vm3, %v2253_v38, 0.0 }
 0x5bc   : > { %v1408_v40 = vrot.slane %v1407_v39, 4 }
 0x5be   : > { %v1409_v41 = vadd.f32 %v1408_v40, %v1407_v39 }
 0x5c0   : > { %v1410_v42 = vrot.slane %v1409_v41, 2 }
 0x5c2   : > { %v1411_v43 = vadd.f32 %v1410_v42, %v1409_v41 }
 0x5c4   : > { %v1412_v44 = vrot.slane %v1411_v43, 1 }
 0x5c6   : > { %v1413_v45 = vadd.f32 %v1412_v44, %v1411_v43 }
 0x5c8   : > { %2254 = vrcp.f32 %v1413_v45 }
 0x5d2   : > { %v2255_v46 = vpop.eup %2254 }
 0x5d3   : > { %v1415_v47 = vmul.f32 %v2255_v46, %v2253_v38 }
 0x5d5   : > { %1418 = vperm.xlu0 %2245, %v1415_v47  }
 0x654   : > { %v1419_v13 = vpop.permute.xlu0 %1418 }
 0x655   : > { %v1421_v15 = vmul.f32 %v1419_v13, %v1179_v28 }
 0x657   : > { %v1422_v16 = vrot.slane %v1421_v15, 4 }
 0x659   : > { %v1423_v18 = vadd.f32 %v1422_v16, %v1421_v15 }
 0x65b   : > { %v1424_v19 = vrot.slane %v1423_v18, 2 }
 0x65d   : > { %v1425_v20 = vadd.f32 %v1424_v19, %v1423_v18 }
 0x65f   : > { %v1426_v21 = vrot.slane %v1425_v20, 1 }
 0x661   : > { %v1427_v22 = vadd.f32 %v1426_v21, %v1425_v20 }
 0x663   : > { %2020 = vmatmul.mubr.f32.vlgmr.msra.gmra.mrb[2].mxu1 %v1427_v22 }
 0x736   : > { %v1511_v28 = vpop.f32.mrb[2].mxu1 }
 0x737   : > { %v1512_v25 = vadd.f32 %v1511_v28, %v1444_v26  ;;  %v2021_v27 = vpop.f32.mrb[3].mxu1 }
 0x739   : > { %v1515_v29 = vmax.f32 %v1512_v25, 0.0 }
 0x73b   : > { %2055 = vmatmul.mubr.f32.vlgmr.msra.gmra.mrb[4].mxu0 %v1515_v29 }
 0x80e   : > { %v1599_v31 = vpop.f32.mrb[4].mxu0 }
 0x80f   : > { %v1600_v32 = vadd.f32 %v1599_v31, %v1532_v30  ;;  %v2056_v33 = vpop.f32.mrb[5].mxu0 }
 0x811   : > { %v1605_v34 = vsel %vm1603_vm4, %v1600_v32, -inf  ;;  %1604 = vst.msk [vmem:[%s2939_s13] sm:$0x1] %vm1603_vm4, %v1600_v32 }
 0x812   : > { %1606 = vmax.xlane.f32.xlu0 %v1605_v34 }
 0x89f   : > { %v1607_v35 = vpop.xlane.xlu0 %1606 }
 0x8a0   : > { %v1608_v36 = vsub.f32 %v1600_v32, %v1607_v35 }
 0x8a2   : > { %v1609_v37 = vmul.f32 1.442695, %v1608_v36 }
 0x8a4   : > { %2256 = vpow2.f32 %v1609_v37 }
 0x8ae   : > { %v2257_v38 = vpop.eup %2256 }
 0x8af   : > { %v1611_v39 = vsel %vm1603_vm4, %v2257_v38, 0.0 }
 0x8b0   : > { %1612 = vadd.xlane.f32.xlu1 %v1611_v39 }
 0x93d   : > { %v1613_v40 = vpop.xlane.xlu1 %1612 }
 0x93e   : > { %2258 = vrcp.f32 %v1613_v40 }
 0x948   : > { %v2259_v41 = vpop.eup %2258 }
 0x949   : > { %v1615_v42 = vmul.f32 %v2259_v41, %v2257_v38 }
 0x94b   : > { %1616 = vst.msk [vmem:[#allocation6] sm:$0x1] %vm1603_vm4, %v1615_v42 }
 0x94c PF: > { %p2195_p2 = scmp.eq.s32.totalorder %s2429_s12, 20  ;;  %s2321_s23 = smov [#allocation6]  }
 0x94d   : > { %s1627_s24 = sshll.u32 %s2321_s23, 4  ;;  %s1628_s24 = int_to_ptr.vmem [resolvable:$true] %s1627_s24 }
 0x94e   : > { %s2272_s29 = scalar_lea.vmem %s1628_s24, 16  ;;  %s2278_s30 = scalar_lea.vmem %s1628_s24, 32 }
 0x94f   : > { %p2273_p3 = scmp.ne.s32.totalorder %s1628_s24, %s2272_s29  ;;  %p2279_p6 = scmp.lt.s32.totalorder %s1628_s24, %s1628_s24 }
 0x950   : > { %p2280_p7 = scmp.lt.s32.totalorder %s2278_s30, %s2272_s29 }
 0x951   : > { %p2274_p4 = pnand %p2273_p3, %p2195_p2 }
 0x952   : > { %p2281_p8 = por %p2280_p7, %p2279_p6 }
 0x953   : > { %p2275_p5 = pneg %p2274_p4 }
 0x955   : > { %p2282_p9 = pnand %p2281_p8, %p2275_p5 }
 0x957   : > { %2285 = shalt.err (!%p2282_p9)
}
 0x958   : > { %s2940_s20 = sld [smem:[#allocation17_spill]] }
 0x95e   : > { %s2941_s21 = smov %s2940_s20  ;;  %s2286_s16 = scalar_lea.hbm %s2940_s20, 16 }
 0x95f   : > { %p2287_p10 = scmp.ne.s32.totalorder %s2941_s21, %s2286_s16  ;;  %p2292_p13 = scmp.lt.u32.totalorder %s2286_s16, %s2941_s21 }
 0x961   : > { %p2288_p11 = pnand %p2287_p10, %p2195_p2 }
 0x963   : > { %p2289_p12 = pneg %p2288_p11 }
 0x965   : > { %p2294_p0 = pnand %p2292_p13, %p2289_p12 }
 0x967   : > { %2297 = shalt.err (!%p2294_p0)
}
 0x968   : > { %2192 = dma.vmem_to_hbm [thread:$0]  (%p2195_p2), %s1628_s24, 16, %s2941_s21, [#allocation7]  }
 0x969   : > { %2305 = dma.done.wait (%p2195_p2), [#allocation7], 16  }
 0x96a   : > { %2307 = vsyncadd (%p2195_p2), [#allocation7], 4294967280 }
 0x96b PF: > { %s2942_s1 = sld [smem:[#allocation10_spill]] }
 0x971   : > { %s38_s20 = sadd.s32 1, %s2942_s1  }
 0x972   : > { %p35_p1 = scmp.ge.s32.totalorder %s38_s20, 23  }
 0x974   :  { %37 = sbr.rel (!%p35_p1) target bundleno = 23 (0x17), region = 143 }
 0x97b   :  { %1643 = vsyncpa [#allocation7], 1 }
 0x97c   :  { %1645 = vsyncpa [#allocation7 + $0x1], 1 }

</bundles_post_ra>
